<compile_context>
chip_gen: v5e
topology: v5e:2x2
jax: 0.10.0
libtpu: 0.0.40
codegen_flags: <defaults>
</compile_context>

<pallas_src>
import functools
import math

import jax
import jax.numpy as jnp
from jax.experimental import pallas as pl
from jax.experimental.pallas import tpu as pltpu


# ---------------------------------------------------------------------------
# Helpers
# ---------------------------------------------------------------------------
def _tile(dim, target):
    """Use `target` if it evenly divides dim, else fall back to the full dim."""
    if dim <= target or dim % target != 0:
        return dim
    return target


def _apply_act(y, act):
    if act == "gelu":
        # TODO(synk): HF BERT uses exact erf-GELU; tanh approximation used here.
        return jax.nn.gelu(y, approximate=True)
    if act == "tanh":
        return jnp.tanh(y)
    return y


# ---------------------------------------------------------------------------
# Tiled linear kernels (optionally fused residual-add + LayerNorm epilogue)
# ---------------------------------------------------------------------------
def _linear_kernel(x_ref, w_ref, b_ref, o_ref, acc_ref, *, act):
    @pl.when(pl.program_id(2) == 0)
    def _():
        acc_ref[...] = jnp.zeros_like(acc_ref)

    acc_ref[...] += jnp.dot(x_ref[...], w_ref[...],
                            preferred_element_type=jnp.float32)

    @pl.when(pl.program_id(2) == pl.num_programs(2) - 1)
    def _():
        y = acc_ref[...] + b_ref[...]
        y = _apply_act(y, act)
        o_ref[...] = y.astype(o_ref.dtype)


def _linear_ln_kernel(x_ref, w_ref, b_ref, r_ref, g_ref, bb_ref, o_ref, acc_ref,
                      *, eps):
    @pl.when(pl.program_id(2) == 0)
    def _():
        acc_ref[...] = jnp.zeros_like(acc_ref)

    acc_ref[...] += jnp.dot(x_ref[...], w_ref[...],
                            preferred_element_type=jnp.float32)

    @pl.when(pl.program_id(2) == pl.num_programs(2) - 1)
    def _():
        # residual add + LayerNorm epilogue (all statistics in f32).
        y = acc_ref[...] + b_ref[...] + r_ref[...].astype(jnp.float32)
        mu = jnp.mean(y, axis=-1, keepdims=True)
        var = jnp.mean((y - mu) ** 2, axis=-1, keepdims=True)
        y = (y - mu) * jax.lax.rsqrt(var + eps)
        o_ref[...] = (y * g_ref[...] + bb_ref[...]).astype(o_ref.dtype)


def linear(x, w, b, act=None, *, residual=None, ln_gamma=None, ln_beta=None,
           eps=1e-12, out_dtype=jnp.bfloat16, tm=256, tn=512, tk=512):
    """y = act(x @ w + b)  or  LayerNorm(x @ w + b + residual) when ln_* given.

    x: [M, K] bf16, w: [K, N] bf16, b: [N] f32.
    """
    M, K = x.shape
    _, N = w.shape
    fuse_ln = ln_gamma is not None

    tm_eff = _tile(M, tm)
    tk_eff = _tile(K, tk)
    tn_eff = N if fuse_ln else _tile(N, tn)   # LN reduces over the full N axis
    grid = (M // tm_eff, N // tn_eff, K // tk_eff)

    in_specs = [
        pl.BlockSpec((tm_eff, tk_eff), lambda i, j, k: (i, k)),
        pl.BlockSpec((tk_eff, tn_eff), lambda i, j, k: (k, j)),
        pl.BlockSpec((1, tn_eff), lambda i, j, k: (0, j)),
    ]
    args = [x, w, b.reshape(1, N)]

    if fuse_ln:
        in_specs += [
            pl.BlockSpec((tm_eff, tn_eff), lambda i, j, k: (i, j)),   # residual
            pl.BlockSpec((1, tn_eff), lambda i, j, k: (0, j)),        # gamma
            pl.BlockSpec((1, tn_eff), lambda i, j, k: (0, j)),        # beta
        ]
        args += [residual, ln_gamma.reshape(1, N), ln_beta.reshape(1, N)]
        kernel = functools.partial(_linear_ln_kernel, eps=eps)
    else:
        kernel = functools.partial(_linear_kernel, act=act)

    cost = pl.CostEstimate(
        flops=2 * M * N * K,
        transcendentals=M * N if (act in ("gelu", "tanh") or fuse_ln) else 0,
        bytes_accessed=2 * (M * K + K * N + M * N),
    )
    return pl.pallas_call(
        kernel,
        out_shape=jax.ShapeDtypeStruct((M, N), out_dtype),
        grid=grid,
        in_specs=in_specs,
        out_specs=pl.BlockSpec((tm_eff, tn_eff), lambda i, j, k: (i, j)),
        scratch_shapes=[pltpu.VMEM((tm_eff, tn_eff), jnp.float32)],
        compiler_params=pltpu.CompilerParams(
            dimension_semantics=("parallel", "parallel", "arbitrary"),
            vmem_limit_bytes=32 * 1024 * 1024),
        cost_estimate=cost,
    )(*args)


# ---------------------------------------------------------------------------
# Residual-free LayerNorm (embeddings only)
# ---------------------------------------------------------------------------
def _ln_kernel(x_ref, g_ref, b_ref, o_ref, *, eps):
    x = x_ref[...].astype(jnp.float32)
    mu = jnp.mean(x, axis=-1, keepdims=True)
    var = jnp.mean((x - mu) ** 2, axis=-1, keepdims=True)
    y = (x - mu) * jax.lax.rsqrt(var + eps)
    o_ref[...] = (y * g_ref[...] + b_ref[...]).astype(o_ref.dtype)


def layernorm(x, gamma, beta, eps=1e-12, out_dtype=jnp.bfloat16, tm=256):
    M, H = x.shape
    tm_eff = _tile(M, tm)
    return pl.pallas_call(
        functools.partial(_ln_kernel, eps=eps),
        out_shape=jax.ShapeDtypeStruct((M, H), out_dtype),
        grid=(M // tm_eff,),
        in_specs=[pl.BlockSpec((tm_eff, H), lambda i: (i, 0)),
                  pl.BlockSpec((1, H), lambda i: (0, 0)),
                  pl.BlockSpec((1, H), lambda i: (0, 0))],
        out_specs=pl.BlockSpec((tm_eff, H), lambda i: (i, 0)),
        compiler_params=pltpu.CompilerParams(
            dimension_semantics=("parallel",)),
    )(x, gamma.reshape(1, H), beta.reshape(1, H))


# ---------------------------------------------------------------------------
# Fused QKV projection + multi-head attention.
# One grid step = one batch element; all heads computed in-block; output is a
# lane-dense [S, H] context slab (heads re-concatenated along lanes).
# ---------------------------------------------------------------------------
def _qkv_attn_kernel(x_ref, wqkv_ref, bqkv_ref, m_ref, o_ref, *, nH, d, H, scale):
    # QKV projection for this batch element: [S, H] @ [H, 3H] (MXU, f32 acc).
    qkv = (jnp.dot(x_ref[...], wqkv_ref[...],
                   preferred_element_type=jnp.float32) + bqkv_ref[...])
    qkv = qkv.astype(jnp.bfloat16)

    mask = m_ref[0]                         # (1, S) additive f32, broadcast over rows
    outs = []
    for h in range(nH):                     # static unroll over heads
        q = qkv[:, h * d:(h + 1) * d]
        k = qkv[:, H + h * d:H + (h + 1) * d]
        v = qkv[:, 2 * H + h * d:2 * H + (h + 1) * d]
        s = jax.lax.dot_general(q, k, (((1,), (1,)), ((), ())),
                                preferred_element_type=jnp.float32)
        s = s * scale + mask
        s = s - jnp.max(s, axis=-1, keepdims=True)
        p = jnp.exp(s)
        p = p * pl.reciprocal(jnp.sum(p, axis=-1, keepdims=True), approx=True)
        outs.append(jnp.dot(p.astype(v.dtype), v,
                            preferred_element_type=jnp.float32))
    o_ref[...] = jnp.concatenate(outs, axis=-1).astype(o_ref.dtype)


def fused_qkv_attention(x, w_qkv, b_qkv, add_mask, *, B, S, H, nH):
    """x: [B*S, H] bf16, w_qkv: [H, 3H] bf16, b_qkv: [3H] f32,
    add_mask: [B, 1, S] additive f32."""
    d = H // nH
    M = B * S
    cost = pl.CostEstimate(
        flops=2 * M * H * 3 * H + 4 * B * nH * S * S * d,
        transcendentals=B * nH * S * S,
        bytes_accessed=2 * (M * H + H * 3 * H + M * H) + 4 * B * S,
    )
    return pl.pallas_call(
        functools.partial(_qkv_attn_kernel, nH=nH, d=d, H=H,
                          scale=1.0 / math.sqrt(d)),
        out_shape=jax.ShapeDtypeStruct((M, H), jnp.bfloat16),
        grid=(B,),
        in_specs=[pl.BlockSpec((S, H), lambda b: (b, 0)),
                  pl.BlockSpec((H, 3 * H), lambda b: (0, 0)),   # resident across b
                  pl.BlockSpec((1, 3 * H), lambda b: (0, 0)),
                  pl.BlockSpec((1, 1, S), lambda b: (b, 0, 0))],
        out_specs=pl.BlockSpec((S, H), lambda b: (b, 0)),
        compiler_params=pltpu.CompilerParams(
            dimension_semantics=("parallel",),
            vmem_limit_bytes=32 * 1024 * 1024),
        cost_estimate=cost,
    )(x, w_qkv, b_qkv.reshape(1, 3 * H), add_mask)


# ---------------------------------------------------------------------------
# Fused pooler (dense + tanh on [CLS]) + classifier head
# ---------------------------------------------------------------------------
def _pooler_cls_kernel(cls_ref, wp_ref, bp_ref, wc_ref, bc_ref, o_ref):
    pooled = jnp.tanh(jnp.dot(cls_ref[...], wp_ref[...],
                              preferred_element_type=jnp.float32) + bp_ref[...])
    logits = jnp.dot(pooled.astype(wc_ref.dtype), wc_ref[...],
                     preferred_element_type=jnp.float32) + bc_ref[...]
    o_ref[...] = logits


def pooler_classifier(cls, wp, bp, wc, bc):
    B, H = cls.shape
    C = wc.shape[1]
    return pl.pallas_call(
        _pooler_cls_kernel,
        out_shape=jax.ShapeDtypeStruct((B, C), jnp.float32),
        grid=(1,),
        in_specs=[pl.BlockSpec((B, H), lambda i: (0, 0)),
                  pl.BlockSpec((H, H), lambda i: (0, 0)),
                  pl.BlockSpec((1, H), lambda i: (0, 0)),
                  pl.BlockSpec((H, C), lambda i: (0, 0)),
                  pl.BlockSpec((1, C), lambda i: (0, 0))],
        out_specs=pl.BlockSpec((B, C), lambda i: (0, 0)),
    )(cls, wp, bp.reshape(1, H), wc, bc.reshape(1, C))


# ---------------------------------------------------------------------------
# Parameters (deterministic synthetic init; no checkpoint loading)
# Matmul weights stored in bf16 (MXU-native); biases / LN / embeddings in f32.
# ---------------------------------------------------------------------------
def init_params(key, vocab, max_pos, H, I, L, num_classes):
    keys = iter(jax.random.split(key, 64))

    def w(shape, dtype=jnp.bfloat16):
        return (0.02 * jax.random.normal(next(keys), shape, jnp.float32)).astype(dtype)

    def zeros(*shape):
        return jnp.zeros(shape, jnp.float32)

    def ones(*shape):
        return jnp.ones(shape, jnp.float32)

    params = dict(
        word_emb=w((vocab, H), jnp.float32),
        pos_emb=w((max_pos, H), jnp.float32),
        type_emb=w((2, H), jnp.float32),
        emb_ln_g=ones(H), emb_ln_b=zeros(H),
        layers=[],
        pooler_w=w((H, H)), pooler_b=zeros(H),
        cls_w=w((H, num_classes)), cls_b=zeros(num_classes),
    )
    for _ in range(L):
        params["layers"].append(dict(
            w_qkv=w((H, 3 * H)), b_qkv=zeros(3 * H),   # fused Q|K|V projection
            wo=w((H, H)), bo=zeros(H),
            ln1_g=ones(H), ln1_b=zeros(H),
            w1=w((H, I)), b1=zeros(I),
            w2=w((I, H)), b2=zeros(H),
            ln2_g=ones(H), ln2_b=zeros(H),
        ))
    return params


# ---------------------------------------------------------------------------
# Forward pass (mirrors BertModel(...).pooler_output -> nn.Linear classifier)
# ---------------------------------------------------------------------------
def bert_classifier_forward(params, input_ids, attention_mask, *, nH):
    B, S = input_ids.shape
    H = params["word_emb"].shape[1]
    M = B * S

    # Embeddings (gather is plain-JAX glue), token_type_ids == 0.
    # TODO(synk): embedding gather has no clean tiled-Pallas equivalent at this size.
    emb = (jnp.take(params["word_emb"], input_ids, axis=0)
           + params["pos_emb"][None, :S, :]
           + params["type_emb"][0][None, None, :])
    x = layernorm(emb.reshape(M, H), params["emb_ln_g"], params["emb_ln_b"])

    # HF-style extended additive attention mask: [B, 1, S], 0 / -10000.
    add_mask = ((1.0 - attention_mask.astype(jnp.float32)) * -10000.0
                ).reshape(B, 1, S)

    # NOTE: dropout layers are identity (inference semantics).
    for lyr in params["layers"]:
        ctx = fused_qkv_attention(x, lyr["w_qkv"], lyr["b_qkv"], add_mask,
                                  B=B, S=S, H=H, nH=nH)                # [M, H]
        x = linear(ctx, lyr["wo"], lyr["bo"], residual=x,
                   ln_gamma=lyr["ln1_g"], ln_beta=lyr["ln1_b"])        # proj + add + LN
        h = linear(x, lyr["w1"], lyr["b1"], act="gelu")                # [M, I]
        x = linear(h, lyr["w2"], lyr["b2"], residual=x,
                   ln_gamma=lyr["ln2_g"], ln_beta=lyr["ln2_b"])        # FFN2 + add + LN

    # Pooler (dense + tanh on [CLS]) fused with the classifier head.
    cls = x.reshape(B, S, H)[:, 0, :]
    logits = pooler_classifier(cls, params["pooler_w"], params["pooler_b"],
                               params["cls_w"], params["cls_b"])
    return logits


# ---------------------------------------------------------------------------
if __name__ == "__main__":
    B, S = 2, 8                  # batch, sequence length
    H, nH, I, L = 32, 2, 64, 2   # hidden, heads, intermediate, layers (tiny BERT)
    vocab, max_pos, num_classes = 100, 16, 3

    key = jax.random.PRNGKey(0)
    pkey, ikey = jax.random.split(key)
    params = init_params(pkey, vocab, max_pos, H, I, L, num_classes)

    input_ids = jax.random.randint(ikey, (B, S), 0, vocab, dtype=jnp.int32)
    attention_mask = jnp.ones((B, S), jnp.int32)

    fwd = jax.jit(functools.partial(bert_classifier_forward, nH=nH))
    logits = fwd(params, input_ids, attention_mask)
    jax.block_until_ready(logits)

    assert logits.shape == (B, num_classes)
    assert jnp.all(jnp.isfinite(logits))
    print("KERNEL_OK")
</pallas_src>

<mosaic_0001>
module attributes {stable_mosaic.version = 11 : i64} {
  func.func @_linear_ln_kernel(%arg0: i32, %arg1: i32, %arg2: i32, %arg3: memref<16x32xbf16, #tpu.memory_space<vmem>>, %arg4: memref<32x32xbf16, #tpu.memory_space<vmem>>, %arg5: memref<1x32xf32, #tpu.memory_space<vmem>>, %arg6: memref<16x32xbf16, #tpu.memory_space<vmem>>, %arg7: memref<1x32xf32, #tpu.memory_space<vmem>>, %arg8: memref<1x32xf32, #tpu.memory_space<vmem>>, %arg9: memref<16x32xbf16, #tpu.memory_space<vmem>>, %arg10: memref<16x32xf32, #tpu.memory_space<vmem>>) attributes {dimension_semantics = [#tpu.dimension_semantics<parallel>, #tpu.dimension_semantics<parallel>, #tpu.dimension_semantics<arbitrary>], iteration_bounds = array<i64: 1, 1, 1>, scalar_prefetch = 0 : i64, scratch_operands = 1 : i64, tpu.core_type = #tpu.core_type<tc>, window_params = [{transform_indices = @transform_0, window_bounds = array<i64: 16, 32>}, {transform_indices = @transform_1, window_bounds = array<i64: 32, 32>}, {transform_indices = @transform_2, window_bounds = array<i64: 1, 32>}, {transform_indices = @transform_3, window_bounds = array<i64: 16, 32>}, {transform_indices = @transform_4, window_bounds = array<i64: 1, 32>}, {transform_indices = @transform_5, window_bounds = array<i64: 1, 32>}, {transform_indices = @transform_6, window_bounds = array<i64: 16, 32>}]} {
    %c0_i32 = arith.constant 0 : i32
    %0 = arith.cmpi eq, %arg2, %c0_i32 : i32
    %1 = arith.extui %0 : i1 to i32
    %c0_i32_0 = arith.constant 0 : i32
    %2 = arith.cmpi ne, %1, %c0_i32_0 : i32
    scf.if %2 {
      %cst_10 = arith.constant 0.000000e+00 : f32
      %12 = vector.broadcast %cst_10 : f32 to vector<16x32xf32>
      %c0_11 = arith.constant 0 : index
      %c0_12 = arith.constant 0 : index
      %13 = vector.load %arg10[%c0_11, %c0_12] : memref<16x32xf32, #tpu.memory_space<vmem>>, vector<16x32xf32>
      tpu.vector_store %arg10[%c0_11, %c0_12], %12 {strides = array<i32>} : memref<16x32xf32, #tpu.memory_space<vmem>>, vector<16x32xf32>,
    } else {
    }
    %c0 = arith.constant 0 : index
    %c0_1 = arith.constant 0 : index
    %3 = vector.load %arg10[%c0, %c0_1] : memref<16x32xf32, #tpu.memory_space<vmem>>, vector<16x32xf32>
    %c0_2 = arith.constant 0 : index
    %c0_3 = arith.constant 0 : index
    %4 = vector.load %arg3[%c0_2, %c0_3] : memref<16x32xbf16, #tpu.memory_space<vmem>>, vector<16x32xbf16>
    %c0_4 = arith.constant 0 : index
    %c0_5 = arith.constant 0 : index
    %5 = vector.load %arg4[%c0_4, %c0_5] : memref<32x32xbf16, #tpu.memory_space<vmem>>, vector<32x32xbf16>
    %cst = arith.constant dense<0.000000e+00> : vector<16x32xf32>
    %6 = tpu.matmul %4, %5, %cst {dimension_numbers = #tpu.dot_dimension_numbers<[1], [0], [0], [1], [0, 0, 1, 1], [], []>} : vector<16x32xbf16>, vector<32x32xbf16>, vector<16x32xf32> -> vector<16x32xf32>
    %7 = arith.addf %3, %6 : vector<16x32xf32>
    %c0_6 = arith.constant 0 : index
    %c0_7 = arith.constant 0 : index
    %8 = vector.load %arg10[%c0_6, %c0_7] : memref<16x32xf32, #tpu.memory_space<vmem>>, vector<16x32xf32>
    tpu.vector_store %arg10[%c0_6, %c0_7], %7 {strides = array<i32>} : memref<16x32xf32, #tpu.memory_space<vmem>>, vector<16x32xf32>,
    %c0_i32_8 = arith.constant 0 : i32
    %9 = arith.cmpi eq, %arg2, %c0_i32_8 : i32
    %10 = arith.extui %9 : i1 to i32
    %c0_i32_9 = arith.constant 0 : i32
    %11 = arith.cmpi ne, %10, %c0_i32_9 : i32
    scf.if %11 {
      %c0_10 = arith.constant 0 : index
      %c0_11 = arith.constant 0 : index
      %12 = vector.load %arg10[%c0_10, %c0_11] : memref<16x32xf32, #tpu.memory_space<vmem>>, vector<16x32xf32>
      %c0_12 = arith.constant 0 : index
      %c0_13 = arith.constant 0 : index
      %13 = vector.load %arg5[%c0_12, %c0_13] : memref<1x32xf32, #tpu.memory_space<vmem>>, vector<1x32xf32>
      %14 = vector.broadcast %13 : vector<1x32xf32> to vector<16x32xf32>
      %15 = arith.addf %12, %14 : vector<16x32xf32>
      %c0_14 = arith.constant 0 : index
      %c0_15 = arith.constant 0 : index
      %16 = vector.load %arg6[%c0_14, %c0_15] : memref<16x32xbf16, #tpu.memory_space<vmem>>, vector<16x32xbf16>
      %17 = arith.extf %16 : vector<16x32xbf16> to vector<16x32xf32>
      %18 = arith.addf %15, %17 : vector<16x32xf32>
      %cst_16 = arith.constant dense<0.000000e+00> : vector<16xf32>
      %19 = vector.multi_reduction <add>, %18, %cst_16 [1] : vector<16x32xf32> to vector<16xf32>
      %20 = vector.shape_cast %19 : vector<16xf32> to vector<16x1xf32>
      %cst_17 = arith.constant 3.200000e+01 : f32
      %21 = vector.broadcast %cst_17 : f32 to vector<16x1xf32>
      %22 = arith.divf %20, %21 : vector<16x1xf32>
      %23 = vector.broadcast %22 : vector<16x1xf32> to vector<16x32xf32>
      %24 = arith.subf %18, %23 : vector<16x32xf32>
      %25 = arith.mulf %24, %24 : vector<16x32xf32>
      %cst_18 = arith.constant dense<0.000000e+00> : vector<16xf32>
      %26 = vector.multi_reduction <add>, %25, %cst_18 [1] : vector<16x32xf32> to vector<16xf32>
      %27 = vector.shape_cast %26 : vector<16xf32> to vector<16x1xf32>
      %cst_19 = arith.constant 3.200000e+01 : f32
      %28 = vector.broadcast %cst_19 : f32 to vector<16x1xf32>
      %29 = arith.divf %27, %28 : vector<16x1xf32>
      %30 = vector.broadcast %22 : vector<16x1xf32> to vector<16x32xf32>
      %31 = arith.subf %18, %30 : vector<16x32xf32>
      %cst_20 = arith.constant 9.99999996E-13 : f32
      %32 = vector.broadcast %cst_20 : f32 to vector<16x1xf32>
      %33 = arith.addf %29, %32 : vector<16x1xf32>
      %34 = math.rsqrt %33 : vector<16x1xf32>
      %35 = vector.broadcast %34 : vector<16x1xf32> to vector<16x32xf32>
      %36 = arith.mulf %31, %35 : vector<16x32xf32>
      %c0_21 = arith.constant 0 : index
      %c0_22 = arith.constant 0 : index
      %37 = vector.load %arg7[%c0_21, %c0_22] : memref<1x32xf32, #tpu.memory_space<vmem>>, vector<1x32xf32>
      %38 = vector.broadcast %37 : vector<1x32xf32> to vector<16x32xf32>
      %39 = arith.mulf %36, %38 : vector<16x32xf32>
      %c0_23 = arith.constant 0 : index
      %c0_24 = arith.constant 0 : index
      %40 = vector.load %arg8[%c0_23, %c0_24] : memref<1x32xf32, #tpu.memory_space<vmem>>, vector<1x32xf32>
      %41 = vector.broadcast %40 : vector<1x32xf32> to vector<16x32xf32>
      %42 = arith.addf %39, %41 : vector<16x32xf32>
      %43 = arith.truncf %42 : vector<16x32xf32> to vector<16x32xbf16>
      %c0_25 = arith.constant 0 : index
      %c0_26 = arith.constant 0 : index
      %44 = vector.load %arg9[%c0_25, %c0_26] : memref<16x32xbf16, #tpu.memory_space<vmem>>, vector<16x32xbf16>
      tpu.vector_store %arg9[%c0_25, %c0_26], %43 {strides = array<i32>} : memref<16x32xbf16, #tpu.memory_space<vmem>>, vector<16x32xbf16>,
    } else {
    }
    return
  }
  func.func @transform_0(%arg0: i32, %arg1: i32, %arg2: i32) -> (i32, i32) {
    %c0_i32 = arith.constant 0 : i32
    return %arg0, %arg2 : i32, i32
  }
  func.func @transform_1(%arg0: i32, %arg1: i32, %arg2: i32) -> (i32, i32) {
    %c0_i32 = arith.constant 0 : i32
    return %arg2, %arg1 : i32, i32
  }
  func.func @transform_2(%arg0: i32, %arg1: i32, %arg2: i32) -> (i32, i32) {
    %c0_i32 = arith.constant 0 : i32
    %c0_i32_0 = arith.constant 0 : i32
    return %c0_i32, %arg1 : i32, i32
  }
  func.func @transform_3(%arg0: i32, %arg1: i32, %arg2: i32) -> (i32, i32) {
    %c0_i32 = arith.constant 0 : i32
    return %arg0, %arg1 : i32, i32
  }
  func.func @transform_4(%arg0: i32, %arg1: i32, %arg2: i32) -> (i32, i32) {
    %c0_i32 = arith.constant 0 : i32
    %c0_i32_0 = arith.constant 0 : i32
    return %c0_i32, %arg1 : i32, i32
  }
  func.func @transform_5(%arg0: i32, %arg1: i32, %arg2: i32) -> (i32, i32) {
    %c0_i32 = arith.constant 0 : i32
    %c0_i32_0 = arith.constant 0 : i32
    return %c0_i32, %arg1 : i32, i32
  }
  func.func @transform_6(%arg0: i32, %arg1: i32, %arg2: i32) -> (i32, i32) {
    %c0_i32 = arith.constant 0 : i32
    return %arg0, %arg1 : i32, i32
  }
}

module attributes {stable_mosaic.version = 11 : i64} {
  func.func @_ln_kernel(%arg0: i32, %arg1: memref<16x32xf32, #tpu.memory_space<vmem>>, %arg2: memref<1x32xf32, #tpu.memory_space<vmem>>, %arg3: memref<1x32xf32, #tpu.memory_space<vmem>>, %arg4: memref<16x32xbf16, #tpu.memory_space<vmem>>) attributes {dimension_semantics = [#tpu.dimension_semantics<parallel>], iteration_bounds = array<i64: 1>, scalar_prefetch = 0 : i64, scratch_operands = 0 : i64, tpu.core_type = #tpu.core_type<tc>, window_params = [{transform_indices = @transform_0, window_bounds = array<i64: 16, 32>}, {pipeline_mode = #tpu.pipeline_mode<synchronous>, transform_indices = @transform_1, window_bounds = array<i64: 1, 32>}, {pipeline_mode = #tpu.pipeline_mode<synchronous>, transform_indices = @transform_2, window_bounds = array<i64: 1, 32>}, {transform_indices = @transform_3, window_bounds = array<i64: 16, 32>}]} {
    %c0 = arith.constant 0 : index
    %c0_0 = arith.constant 0 : index
    %0 = vector.load %arg1[%c0, %c0_0] : memref<16x32xf32, #tpu.memory_space<vmem>>, vector<16x32xf32>
    %cst = arith.constant dense<0.000000e+00> : vector<16xf32>
    %1 = vector.multi_reduction <add>, %0, %cst [1] : vector<16x32xf32> to vector<16xf32>
    %2 = vector.shape_cast %1 : vector<16xf32> to vector<16x1xf32>
    %cst_1 = arith.constant 3.200000e+01 : f32
    %3 = vector.broadcast %cst_1 : f32 to vector<16x1xf32>
    %4 = arith.divf %2, %3 : vector<16x1xf32>
    %5 = vector.broadcast %4 : vector<16x1xf32> to vector<16x32xf32>
    %6 = arith.subf %0, %5 : vector<16x32xf32>
    %7 = arith.mulf %6, %6 : vector<16x32xf32>
    %cst_2 = arith.constant dense<0.000000e+00> : vector<16xf32>
    %8 = vector.multi_reduction <add>, %7, %cst_2 [1] : vector<16x32xf32> to vector<16xf32>
    %9 = vector.shape_cast %8 : vector<16xf32> to vector<16x1xf32>
    %cst_3 = arith.constant 3.200000e+01 : f32
    %10 = vector.broadcast %cst_3 : f32 to vector<16x1xf32>
    %11 = arith.divf %9, %10 : vector<16x1xf32>
    %12 = vector.broadcast %4 : vector<16x1xf32> to vector<16x32xf32>
    %13 = arith.subf %0, %12 : vector<16x32xf32>
    %cst_4 = arith.constant 9.99999996E-13 : f32
    %14 = vector.broadcast %cst_4 : f32 to vector<16x1xf32>
    %15 = arith.addf %11, %14 : vector<16x1xf32>
    %16 = math.rsqrt %15 : vector<16x1xf32>
    %17 = vector.broadcast %16 : vector<16x1xf32> to vector<16x32xf32>
    %18 = arith.mulf %13, %17 : vector<16x32xf32>
    %c0_5 = arith.constant 0 : index
    %c0_6 = arith.constant 0 : index
    %19 = vector.load %arg2[%c0_5, %c0_6] : memref<1x32xf32, #tpu.memory_space<vmem>>, vector<1x32xf32>
    %20 = vector.broadcast %19 : vector<1x32xf32> to vector<16x32xf32>
    %21 = arith.mulf %18, %20 : vector<16x32xf32>
    %c0_7 = arith.constant 0 : index
    %c0_8 = arith.constant 0 : index
    %22 = vector.load %arg3[%c0_7, %c0_8] : memref<1x32xf32, #tpu.memory_space<vmem>>, vector<1x32xf32>
    %23 = vector.broadcast %22 : vector<1x32xf32> to vector<16x32xf32>
    %24 = arith.addf %21, %23 : vector<16x32xf32>
    %25 = arith.truncf %24 : vector<16x32xf32> to vector<16x32xbf16>
    %c0_9 = arith.constant 0 : index
    %c0_10 = arith.constant 0 : index
    %26 = vector.load %arg4[%c0_9, %c0_10] : memref<16x32xbf16, #tpu.memory_space<vmem>>, vector<16x32xbf16>
    tpu.vector_store %arg4[%c0_9, %c0_10], %25 {strides = array<i32>} : memref<16x32xbf16, #tpu.memory_space<vmem>>, vector<16x32xbf16>,
    return
  }
  func.func @transform_0(%arg0: i32) -> (i32, i32) {
    %c0_i32 = arith.constant 0 : i32
    %c0_i32_0 = arith.constant 0 : i32
    return %arg0, %c0_i32 : i32, i32
  }
  func.func @transform_1(%arg0: i32) -> (i32, i32) {
    %c0_i32 = arith.constant 0 : i32
    %c0_i32_0 = arith.constant 0 : i32
    %c0_i32_1 = arith.constant 0 : i32
    return %c0_i32, %c0_i32_0 : i32, i32
  }
  func.func @transform_2(%arg0: i32) -> (i32, i32) {
    %c0_i32 = arith.constant 0 : i32
    %c0_i32_0 = arith.constant 0 : i32
    %c0_i32_1 = arith.constant 0 : i32
    return %c0_i32, %c0_i32_0 : i32, i32
  }
  func.func @transform_3(%arg0: i32) -> (i32, i32) {
    %c0_i32 = arith.constant 0 : i32
    %c0_i32_0 = arith.constant 0 : i32
    return %arg0, %c0_i32 : i32, i32
  }
}

module attributes {stable_mosaic.version = 11 : i64} {
  func.func @_qkv_attn_kernel(%arg0: i32, %arg1: memref<8x32xbf16, #tpu.memory_space<vmem>>, %arg2: memref<32x96xbf16, #tpu.memory_space<vmem>>, %arg3: memref<1x96xf32, #tpu.memory_space<vmem>>, %arg4: memref<1x1x8xf32, #tpu.memory_space<vmem>>, %arg5: memref<8x32xbf16, #tpu.memory_space<vmem>>) attributes {dimension_semantics = [#tpu.dimension_semantics<parallel>], iteration_bounds = array<i64: 2>, scalar_prefetch = 0 : i64, scratch_operands = 0 : i64, tpu.core_type = #tpu.core_type<tc>, window_params = [{transform_indices = @transform_0, window_bounds = array<i64: 8, 32>}, {pipeline_mode = #tpu.pipeline_mode<synchronous>, transform_indices = @transform_1, window_bounds = array<i64: 32, 96>}, {pipeline_mode = #tpu.pipeline_mode<synchronous>, transform_indices = @transform_2, window_bounds = array<i64: 1, 96>}, {transform_indices = @transform_3, window_bounds = array<i64: 1, 1, 8>}, {transform_indices = @transform_4, window_bounds = array<i64: 8, 32>}]} {
    %c0 = arith.constant 0 : index
    %c0_0 = arith.constant 0 : index
    %0 = vector.load %arg1[%c0, %c0_0] : memref<8x32xbf16, #tpu.memory_space<vmem>>, vector<8x32xbf16>
    %c0_1 = arith.constant 0 : index
    %c0_2 = arith.constant 0 : index
    %1 = vector.load %arg2[%c0_1, %c0_2] : memref<32x96xbf16, #tpu.memory_space<vmem>>, vector<32x96xbf16>
    %cst = arith.constant dense<0.000000e+00> : vector<8x96xf32>
    %2 = tpu.matmul %0, %1, %cst {dimension_numbers = #tpu.dot_dimension_numbers<[1], [0], [0], [1], [0, 0, 1, 1], [], []>} : vector<8x32xbf16>, vector<32x96xbf16>, vector<8x96xf32> -> vector<8x96xf32>
    %c0_3 = arith.constant 0 : index
    %c0_4 = arith.constant 0 : index
    %3 = vector.load %arg3[%c0_3, %c0_4] : memref<1x96xf32, #tpu.memory_space<vmem>>, vector<1x96xf32>
    %4 = vector.broadcast %3 : vector<1x96xf32> to vector<8x96xf32>
    %5 = arith.addf %2, %4 : vector<8x96xf32>
    %6 = arith.truncf %5 : vector<8x96xf32> to vector<8x96xbf16>
    %c0_5 = arith.constant 0 : index
    %c0_6 = arith.constant 0 : index
    %c0_7 = arith.constant 0 : index
    %7 = vector.load %arg4[%c0_5, %c0_6, %c0_7] : memref<1x1x8xf32, #tpu.memory_space<vmem>>, vector<1x1x8xf32>
    %8 = vector.shape_cast %7 : vector<1x1x8xf32> to vector<1x8xf32>
    %9 = vector.extract_strided_slice %6 {offsets = [0, 0], sizes = [8, 16], strides = [1, 1]} : vector<8x96xbf16> to vector<8x16xbf16>
    %10 = vector.extract_strided_slice %6 {offsets = [0, 32], sizes = [8, 16], strides = [1, 1]} : vector<8x96xbf16> to vector<8x16xbf16>
    %11 = vector.extract_strided_slice %6 {offsets = [0, 64], sizes = [8, 16], strides = [1, 1]} : vector<8x96xbf16> to vector<8x16xbf16>
    %cst_8 = arith.constant dense<0.000000e+00> : vector<8x8xf32>
    %12 = tpu.matmul %9, %10, %cst_8 {dimension_numbers = #tpu.dot_dimension_numbers<[1], [1], [0], [0], [0, 0, 1, 0], [], []>} : vector<8x16xbf16>, vector<8x16xbf16>, vector<8x8xf32> -> vector<8x8xf32>
    %cst_9 = arith.constant 2.500000e-01 : f32
    %13 = vector.broadcast %cst_9 : f32 to vector<8x8xf32>
    %14 = arith.mulf %12, %13 : vector<8x8xf32>
    %15 = vector.broadcast %8 : vector<1x8xf32> to vector<8x8xf32>
    %16 = arith.addf %14, %15 : vector<8x8xf32>
    %cst_10 = arith.constant dense<0xFF800000> : vector<8xf32>
    %17 = vector.multi_reduction <maximumf>, %16, %cst_10 [1] : vector<8x8xf32> to vector<8xf32>
    %18 = vector.shape_cast %17 : vector<8xf32> to vector<8x1xf32>
    %19 = vector.broadcast %18 : vector<8x1xf32> to vector<8x8xf32>
    %20 = arith.subf %16, %19 : vector<8x8xf32>
    %21 = math.exp %20 : vector<8x8xf32>
    %cst_11 = arith.constant dense<0.000000e+00> : vector<8xf32>
    %22 = vector.multi_reduction <add>, %21, %cst_11 [1] : vector<8x8xf32> to vector<8xf32>
    %23 = vector.shape_cast %22 : vector<8xf32> to vector<8x1xf32>
    %24 = tpu.reciprocal %23 {approx = true} : vector<8x1xf32> -> vector<8x1xf32>
    %25 = vector.broadcast %24 : vector<8x1xf32> to vector<8x8xf32>
    %26 = arith.mulf %21, %25 : vector<8x8xf32>
    %27 = arith.truncf %26 : vector<8x8xf32> to vector<8x8xbf16>
    %cst_12 = arith.constant dense<0.000000e+00> : vector<8x16xf32>
    %28 = tpu.matmul %27, %11, %cst_12 {dimension_numbers = #tpu.dot_dimension_numbers<[1], [0], [0], [1], [0, 0, 1, 1], [], []>} : vector<8x8xbf16>, vector<8x16xbf16>, vector<8x16xf32> -> vector<8x16xf32>
    %29 = vector.extract_strided_slice %6 {offsets = [0, 16], sizes = [8, 16], strides = [1, 1]} : vector<8x96xbf16> to vector<8x16xbf16>
    %30 = vector.extract_strided_slice %6 {offsets = [0, 48], sizes = [8, 16], strides = [1, 1]} : vector<8x96xbf16> to vector<8x16xbf16>
    %31 = vector.extract_strided_slice %6 {offsets = [0, 80], sizes = [8, 16], strides = [1, 1]} : vector<8x96xbf16> to vector<8x16xbf16>
    %cst_13 = arith.constant dense<0.000000e+00> : vector<8x8xf32>
    %32 = tpu.matmul %29, %30, %cst_13 {dimension_numbers = #tpu.dot_dimension_numbers<[1], [1], [0], [0], [0, 0, 1, 0], [], []>} : vector<8x16xbf16>, vector<8x16xbf16>, vector<8x8xf32> -> vector<8x8xf32>
    %cst_14 = arith.constant 2.500000e-01 : f32
    %33 = vector.broadcast %cst_14 : f32 to vector<8x8xf32>
    %34 = arith.mulf %32, %33 : vector<8x8xf32>
    %35 = vector.broadcast %8 : vector<1x8xf32> to vector<8x8xf32>
    %36 = arith.addf %34, %35 : vector<8x8xf32>
    %cst_15 = arith.constant dense<0xFF800000> : vector<8xf32>
    %37 = vector.multi_reduction <maximumf>, %36, %cst_15 [1] : vector<8x8xf32> to vector<8xf32>
    %38 = vector.shape_cast %37 : vector<8xf32> to vector<8x1xf32>
    %39 = vector.broadcast %38 : vector<8x1xf32> to vector<8x8xf32>
    %40 = arith.subf %36, %39 : vector<8x8xf32>
    %41 = math.exp %40 : vector<8x8xf32>
    %cst_16 = arith.constant dense<0.000000e+00> : vector<8xf32>
    %42 = vector.multi_reduction <add>, %41, %cst_16 [1] : vector<8x8xf32> to vector<8xf32>
    %43 = vector.shape_cast %42 : vector<8xf32> to vector<8x1xf32>
    %44 = tpu.reciprocal %43 {approx = true} : vector<8x1xf32> -> vector<8x1xf32>
    %45 = vector.broadcast %44 : vector<8x1xf32> to vector<8x8xf32>
    %46 = arith.mulf %41, %45 : vector<8x8xf32>
    %47 = arith.truncf %46 : vector<8x8xf32> to vector<8x8xbf16>
    %cst_17 = arith.constant dense<0.000000e+00> : vector<8x16xf32>
    %48 = tpu.matmul %47, %31, %cst_17 {dimension_numbers = #tpu.dot_dimension_numbers<[1], [0], [0], [1], [0, 0, 1, 1], [], []>} : vector<8x8xbf16>, vector<8x16xbf16>, vector<8x16xf32> -> vector<8x16xf32>
    %49 = tpu.concatenate %28, %48 in 1 : vector<8x16xf32>, vector<8x16xf32> -> vector<8x32xf32>
    %50 = arith.truncf %49 : vector<8x32xf32> to vector<8x32xbf16>
    %c0_18 = arith.constant 0 : index
    %c0_19 = arith.constant 0 : index
    %51 = vector.load %arg5[%c0_18, %c0_19] : memref<8x32xbf16, #tpu.memory_space<vmem>>, vector<8x32xbf16>
    tpu.vector_store %arg5[%c0_18, %c0_19], %50 {strides = array<i32>} : memref<8x32xbf16, #tpu.memory_space<vmem>>, vector<8x32xbf16>,
    return
  }
  func.func @transform_0(%arg0: i32) -> (i32, i32) {
    %c0_i32 = arith.constant 0 : i32
    %c0_i32_0 = arith.constant 0 : i32
    return %arg0, %c0_i32 : i32, i32
  }
  func.func @transform_1(%arg0: i32) -> (i32, i32) {
    %c0_i32 = arith.constant 0 : i32
    %c0_i32_0 = arith.constant 0 : i32
    %c0_i32_1 = arith.constant 0 : i32
    return %c0_i32, %c0_i32_0 : i32, i32
  }
  func.func @transform_2(%arg0: i32) -> (i32, i32) {
    %c0_i32 = arith.constant 0 : i32
    %c0_i32_0 = arith.constant 0 : i32
    %c0_i32_1 = arith.constant 0 : i32
    return %c0_i32, %c0_i32_0 : i32, i32
  }
  func.func @transform_3(%arg0: i32) -> (i32, i32, i32) {
    %c0_i32 = arith.constant 0 : i32
    %c0_i32_0 = arith.constant 0 : i32
    %c0_i32_1 = arith.constant 0 : i32
    return %arg0, %c0_i32, %c0_i32_0 : i32, i32, i32
  }
  func.func @transform_4(%arg0: i32) -> (i32, i32) {
    %c0_i32 = arith.constant 0 : i32
    %c0_i32_0 = arith.constant 0 : i32
    return %arg0, %c0_i32 : i32, i32
  }
}

module attributes {stable_mosaic.version = 11 : i64} {
  func.func @_linear_kernel(%arg0: i32, %arg1: i32, %arg2: i32, %arg3: memref<16x32xbf16, #tpu.memory_space<vmem>>, %arg4: memref<32x64xbf16, #tpu.memory_space<vmem>>, %arg5: memref<1x64xf32, #tpu.memory_space<vmem>>, %arg6: memref<16x64xbf16, #tpu.memory_space<vmem>>, %arg7: memref<16x64xf32, #tpu.memory_space<vmem>>) attributes {dimension_semantics = [#tpu.dimension_semantics<parallel>, #tpu.dimension_semantics<parallel>, #tpu.dimension_semantics<arbitrary>], iteration_bounds = array<i64: 1, 1, 1>, scalar_prefetch = 0 : i64, scratch_operands = 1 : i64, tpu.core_type = #tpu.core_type<tc>, window_params = [{transform_indices = @transform_0, window_bounds = array<i64: 16, 32>}, {transform_indices = @transform_1, window_bounds = array<i64: 32, 64>}, {transform_indices = @transform_2, window_bounds = array<i64: 1, 64>}, {transform_indices = @transform_3, window_bounds = array<i64: 16, 64>}]} {
    %c0_i32 = arith.constant 0 : i32
    %0 = arith.cmpi eq, %arg2, %c0_i32 : i32
    %1 = arith.extui %0 : i1 to i32
    %c0_i32_0 = arith.constant 0 : i32
    %2 = arith.cmpi ne, %1, %c0_i32_0 : i32
    scf.if %2 {
      %cst_10 = arith.constant 0.000000e+00 : f32
      %12 = vector.broadcast %cst_10 : f32 to vector<16x64xf32>
      %c0_11 = arith.constant 0 : index
      %c0_12 = arith.constant 0 : index
      %13 = vector.load %arg7[%c0_11, %c0_12] : memref<16x64xf32, #tpu.memory_space<vmem>>, vector<16x64xf32>
      tpu.vector_store %arg7[%c0_11, %c0_12], %12 {strides = array<i32>} : memref<16x64xf32, #tpu.memory_space<vmem>>, vector<16x64xf32>,
    } else {
    }
    %c0 = arith.constant 0 : index
    %c0_1 = arith.constant 0 : index
    %3 = vector.load %arg7[%c0, %c0_1] : memref<16x64xf32, #tpu.memory_space<vmem>>, vector<16x64xf32>
    %c0_2 = arith.constant 0 : index
    %c0_3 = arith.constant 0 : index
    %4 = vector.load %arg3[%c0_2, %c0_3] : memref<16x32xbf16, #tpu.memory_space<vmem>>, vector<16x32xbf16>
    %c0_4 = arith.constant 0 : index
    %c0_5 = arith.constant 0 : index
    %5 = vector.load %arg4[%c0_4, %c0_5] : memref<32x64xbf16, #tpu.memory_space<vmem>>, vector<32x64xbf16>
    %cst = arith.constant dense<0.000000e+00> : vector<16x64xf32>
    %6 = tpu.matmul %4, %5, %cst {dimension_numbers = #tpu.dot_dimension_numbers<[1], [0], [0], [1], [0, 0, 1, 1], [], []>} : vector<16x32xbf16>, vector<32x64xbf16>, vector<16x64xf32> -> vector<16x64xf32>
    %7 = arith.addf %3, %6 : vector<16x64xf32>
    %c0_6 = arith.constant 0 : index
    %c0_7 = arith.constant 0 : index
    %8 = vector.load %arg7[%c0_6, %c0_7] : memref<16x64xf32, #tpu.memory_space<vmem>>, vector<16x64xf32>
    tpu.vector_store %arg7[%c0_6, %c0_7], %7 {strides = array<i32>} : memref<16x64xf32, #tpu.memory_space<vmem>>, vector<16x64xf32>,
    %c0_i32_8 = arith.constant 0 : i32
    %9 = arith.cmpi eq, %arg2, %c0_i32_8 : i32
    %10 = arith.extui %9 : i1 to i32
    %c0_i32_9 = arith.constant 0 : i32
    %11 = arith.cmpi ne, %10, %c0_i32_9 : i32
    scf.if %11 {
      %c0_10 = arith.constant 0 : index
      %c0_11 = arith.constant 0 : index
      %12 = vector.load %arg7[%c0_10, %c0_11] : memref<16x64xf32, #tpu.memory_space<vmem>>, vector<16x64xf32>
      %c0_12 = arith.constant 0 : index
      %c0_13 = arith.constant 0 : index
      %13 = vector.load %arg5[%c0_12, %c0_13] : memref<1x64xf32, #tpu.memory_space<vmem>>, vector<1x64xf32>
      %14 = vector.broadcast %13 : vector<1x64xf32> to vector<16x64xf32>
      %15 = arith.addf %12, %14 : vector<16x64xf32>
      %16 = arith.mulf %15, %15 : vector<16x64xf32>
      %17 = arith.mulf %15, %16 : vector<16x64xf32>
      %cst_14 = arith.constant 4.471500e-02 : f32
      %18 = vector.broadcast %cst_14 : f32 to vector<16x64xf32>
      %19 = arith.mulf %18, %17 : vector<16x64xf32>
      %20 = arith.addf %15, %19 : vector<16x64xf32>
      %cst_15 = arith.constant 0.797884583 : f32
      %21 = vector.broadcast %cst_15 : f32 to vector<16x64xf32>
      %22 = arith.mulf %21, %20 : vector<16x64xf32>
      %23 = math.tanh %22 : vector<16x64xf32>
      %cst_16 = arith.constant 1.000000e+00 : f32
      %24 = vector.broadcast %cst_16 : f32 to vector<16x64xf32>
      %25 = arith.addf %24, %23 : vector<16x64xf32>
      %cst_17 = arith.constant 5.000000e-01 : f32
      %26 = vector.broadcast %cst_17 : f32 to vector<16x64xf32>
      %27 = arith.mulf %26, %25 : vector<16x64xf32>
      %28 = arith.mulf %15, %27 : vector<16x64xf32>
      %29 = arith.truncf %28 : vector<16x64xf32> to vector<16x64xbf16>
      %c0_18 = arith.constant 0 : index
      %c0_19 = arith.constant 0 : index
      %30 = vector.load %arg6[%c0_18, %c0_19] : memref<16x64xbf16, #tpu.memory_space<vmem>>, vector<16x64xbf16>
      tpu.vector_store %arg6[%c0_18, %c0_19], %29 {strides = array<i32>} : memref<16x64xbf16, #tpu.memory_space<vmem>>, vector<16x64xbf16>,
    } else {
    }
    return
  }
  func.func @transform_0(%arg0: i32, %arg1: i32, %arg2: i32) -> (i32, i32) {
    %c0_i32 = arith.constant 0 : i32
    return %arg0, %arg2 : i32, i32
  }
  func.func @transform_1(%arg0: i32, %arg1: i32, %arg2: i32) -> (i32, i32) {
    %c0_i32 = arith.constant 0 : i32
    return %arg2, %arg1 : i32, i32
  }
  func.func @transform_2(%arg0: i32, %arg1: i32, %arg2: i32) -> (i32, i32) {
    %c0_i32 = arith.constant 0 : i32
    %c0_i32_0 = arith.constant 0 : i32
    return %c0_i32, %arg1 : i32, i32
  }
  func.func @transform_3(%arg0: i32, %arg1: i32, %arg2: i32) -> (i32, i32) {
    %c0_i32 = arith.constant 0 : i32
    return %arg0, %arg1 : i32, i32
  }
}

module attributes {stable_mosaic.version = 11 : i64} {
  func.func @_linear_ln_kernel(%arg0: i32, %arg1: i32, %arg2: i32, %arg3: memref<16x64xbf16, #tpu.memory_space<vmem>>, %arg4: memref<64x32xbf16, #tpu.memory_space<vmem>>, %arg5: memref<1x32xf32, #tpu.memory_space<vmem>>, %arg6: memref<16x32xbf16, #tpu.memory_space<vmem>>, %arg7: memref<1x32xf32, #tpu.memory_space<vmem>>, %arg8: memref<1x32xf32, #tpu.memory_space<vmem>>, %arg9: memref<16x32xbf16, #tpu.memory_space<vmem>>, %arg10: memref<16x32xf32, #tpu.memory_space<vmem>>) attributes {dimension_semantics = [#tpu.dimension_semantics<parallel>, #tpu.dimension_semantics<parallel>, #tpu.dimension_semantics<arbitrary>], iteration_bounds = array<i64: 1, 1, 1>, scalar_prefetch = 0 : i64, scratch_operands = 1 : i64, tpu.core_type = #tpu.core_type<tc>, window_params = [{transform_indices = @transform_0, window_bounds = array<i64: 16, 64>}, {transform_indices = @transform_1, window_bounds = array<i64: 64, 32>}, {transform_indices = @transform_2, window_bounds = array<i64: 1, 32>}, {transform_indices = @transform_3, window_bounds = array<i64: 16, 32>}, {transform_indices = @transform_4, window_bounds = array<i64: 1, 32>}, {transform_indices = @transform_5, window_bounds = array<i64: 1, 32>}, {transform_indices = @transform_6, window_bounds = array<i64: 16, 32>}]} {
    %c0_i32 = arith.constant 0 : i32
    %0 = arith.cmpi eq, %arg2, %c0_i32 : i32
    %1 = arith.extui %0 : i1 to i32
    %c0_i32_0 = arith.constant 0 : i32
    %2 = arith.cmpi ne, %1, %c0_i32_0 : i32
    scf.if %2 {
      %cst_10 = arith.constant 0.000000e+00 : f32
      %12 = vector.broadcast %cst_10 : f32 to vector<16x32xf32>
      %c0_11 = arith.constant 0 : index
      %c0_12 = arith.constant 0 : index
      %13 = vector.load %arg10[%c0_11, %c0_12] : memref<16x32xf32, #tpu.memory_space<vmem>>, vector<16x32xf32>
      tpu.vector_store %arg10[%c0_11, %c0_12], %12 {strides = array<i32>} : memref<16x32xf32, #tpu.memory_space<vmem>>, vector<16x32xf32>,
    } else {
    }
    %c0 = arith.constant 0 : index
    %c0_1 = arith.constant 0 : index
    %3 = vector.load %arg10[%c0, %c0_1] : memref<16x32xf32, #tpu.memory_space<vmem>>, vector<16x32xf32>
    %c0_2 = arith.constant 0 : index
    %c0_3 = arith.constant 0 : index
    %4 = vector.load %arg3[%c0_2, %c0_3] : memref<16x64xbf16, #tpu.memory_space<vmem>>, vector<16x64xbf16>
    %c0_4 = arith.constant 0 : index
    %c0_5 = arith.constant 0 : index
    %5 = vector.load %arg4[%c0_4, %c0_5] : memref<64x32xbf16, #tpu.memory_space<vmem>>, vector<64x32xbf16>
    %cst = arith.constant dense<0.000000e+00> : vector<16x32xf32>
    %6 = tpu.matmul %4, %5, %cst {dimension_numbers = #tpu.dot_dimension_numbers<[1], [0], [0], [1], [0, 0, 1, 1], [], []>} : vector<16x64xbf16>, vector<64x32xbf16>, vector<16x32xf32> -> vector<16x32xf32>
    %7 = arith.addf %3, %6 : vector<16x32xf32>
    %c0_6 = arith.constant 0 : index
    %c0_7 = arith.constant 0 : index
    %8 = vector.load %arg10[%c0_6, %c0_7] : memref<16x32xf32, #tpu.memory_space<vmem>>, vector<16x32xf32>
    tpu.vector_store %arg10[%c0_6, %c0_7], %7 {strides = array<i32>} : memref<16x32xf32, #tpu.memory_space<vmem>>, vector<16x32xf32>,
    %c0_i32_8 = arith.constant 0 : i32
    %9 = arith.cmpi eq, %arg2, %c0_i32_8 : i32
    %10 = arith.extui %9 : i1 to i32
    %c0_i32_9 = arith.constant 0 : i32
    %11 = arith.cmpi ne, %10, %c0_i32_9 : i32
    scf.if %11 {
      %c0_10 = arith.constant 0 : index
      %c0_11 = arith.constant 0 : index
      %12 = vector.load %arg10[%c0_10, %c0_11] : memref<16x32xf32, #tpu.memory_space<vmem>>, vector<16x32xf32>
      %c0_12 = arith.constant 0 : index
      %c0_13 = arith.constant 0 : index
      %13 = vector.load %arg5[%c0_12, %c0_13] : memref<1x32xf32, #tpu.memory_space<vmem>>, vector<1x32xf32>
      %14 = vector.broadcast %13 : vector<1x32xf32> to vector<16x32xf32>
      %15 = arith.addf %12, %14 : vector<16x32xf32>
      %c0_14 = arith.constant 0 : index
      %c0_15 = arith.constant 0 : index
      %16 = vector.load %arg6[%c0_14, %c0_15] : memref<16x32xbf16, #tpu.memory_space<vmem>>, vector<16x32xbf16>
      %17 = arith.extf %16 : vector<16x32xbf16> to vector<16x32xf32>
      %18 = arith.addf %15, %17 : vector<16x32xf32>
      %cst_16 = arith.constant dense<0.000000e+00> : vector<16xf32>
      %19 = vector.multi_reduction <add>, %18, %cst_16 [1] : vector<16x32xf32> to vector<16xf32>
      %20 = vector.shape_cast %19 : vector<16xf32> to vector<16x1xf32>
      %cst_17 = arith.constant 3.200000e+01 : f32
      %21 = vector.broadcast %cst_17 : f32 to vector<16x1xf32>
      %22 = arith.divf %20, %21 : vector<16x1xf32>
      %23 = vector.broadcast %22 : vector<16x1xf32> to vector<16x32xf32>
      %24 = arith.subf %18, %23 : vector<16x32xf32>
      %25 = arith.mulf %24, %24 : vector<16x32xf32>
      %cst_18 = arith.constant dense<0.000000e+00> : vector<16xf32>
      %26 = vector.multi_reduction <add>, %25, %cst_18 [1] : vector<16x32xf32> to vector<16xf32>
      %27 = vector.shape_cast %26 : vector<16xf32> to vector<16x1xf32>
      %cst_19 = arith.constant 3.200000e+01 : f32
      %28 = vector.broadcast %cst_19 : f32 to vector<16x1xf32>
      %29 = arith.divf %27, %28 : vector<16x1xf32>
      %30 = vector.broadcast %22 : vector<16x1xf32> to vector<16x32xf32>
      %31 = arith.subf %18, %30 : vector<16x32xf32>
      %cst_20 = arith.constant 9.99999996E-13 : f32
      %32 = vector.broadcast %cst_20 : f32 to vector<16x1xf32>
      %33 = arith.addf %29, %32 : vector<16x1xf32>
      %34 = math.rsqrt %33 : vector<16x1xf32>
      %35 = vector.broadcast %34 : vector<16x1xf32> to vector<16x32xf32>
      %36 = arith.mulf %31, %35 : vector<16x32xf32>
      %c0_21 = arith.constant 0 : index
      %c0_22 = arith.constant 0 : index
      %37 = vector.load %arg7[%c0_21, %c0_22] : memref<1x32xf32, #tpu.memory_space<vmem>>, vector<1x32xf32>
      %38 = vector.broadcast %37 : vector<1x32xf32> to vector<16x32xf32>
      %39 = arith.mulf %36, %38 : vector<16x32xf32>
      %c0_23 = arith.constant 0 : index
      %c0_24 = arith.constant 0 : index
      %40 = vector.load %arg8[%c0_23, %c0_24] : memref<1x32xf32, #tpu.memory_space<vmem>>, vector<1x32xf32>
      %41 = vector.broadcast %40 : vector<1x32xf32> to vector<16x32xf32>
      %42 = arith.addf %39, %41 : vector<16x32xf32>
      %43 = arith.truncf %42 : vector<16x32xf32> to vector<16x32xbf16>
      %c0_25 = arith.constant 0 : index
      %c0_26 = arith.constant 0 : index
      %44 = vector.load %arg9[%c0_25, %c0_26] : memref<16x32xbf16, #tpu.memory_space<vmem>>, vector<16x32xbf16>
      tpu.vector_store %arg9[%c0_25, %c0_26], %43 {strides = array<i32>} : memref<16x32xbf16, #tpu.memory_space<vmem>>, vector<16x32xbf16>,
    } else {
    }
    return
  }
  func.func @transform_0(%arg0: i32, %arg1: i32, %arg2: i32) -> (i32, i32) {
    %c0_i32 = arith.constant 0 : i32
    return %arg0, %arg2 : i32, i32
  }
  func.func @transform_1(%arg0: i32, %arg1: i32, %arg2: i32) -> (i32, i32) {
    %c0_i32 = arith.constant 0 : i32
    return %arg2, %arg1 : i32, i32
  }
  func.func @transform_2(%arg0: i32, %arg1: i32, %arg2: i32) -> (i32, i32) {
    %c0_i32 = arith.constant 0 : i32
    %c0_i32_0 = arith.constant 0 : i32
    return %c0_i32, %arg1 : i32, i32
  }
  func.func @transform_3(%arg0: i32, %arg1: i32, %arg2: i32) -> (i32, i32) {
    %c0_i32 = arith.constant 0 : i32
    return %arg0, %arg1 : i32, i32
  }
  func.func @transform_4(%arg0: i32, %arg1: i32, %arg2: i32) -> (i32, i32) {
    %c0_i32 = arith.constant 0 : i32
    %c0_i32_0 = arith.constant 0 : i32
    return %c0_i32, %arg1 : i32, i32
  }
  func.func @transform_5(%arg0: i32, %arg1: i32, %arg2: i32) -> (i32, i32) {
    %c0_i32 = arith.constant 0 : i32
    %c0_i32_0 = arith.constant 0 : i32
    return %c0_i32, %arg1 : i32, i32
  }
  func.func @transform_6(%arg0: i32, %arg1: i32, %arg2: i32) -> (i32, i32) {
    %c0_i32 = arith.constant 0 : i32
    return %arg0, %arg1 : i32, i32
  }
}

module attributes {stable_mosaic.version = 11 : i64} {
  func.func @_pooler_cls_kernel(%arg0: i32, %arg1: memref<2x32xbf16, #tpu.memory_space<vmem>>, %arg2: memref<32x32xbf16, #tpu.memory_space<vmem>>, %arg3: memref<1x32xf32, #tpu.memory_space<vmem>>, %arg4: memref<32x3xbf16, #tpu.memory_space<vmem>>, %arg5: memref<1x3xf32, #tpu.memory_space<vmem>>, %arg6: memref<2x3xf32, #tpu.memory_space<vmem>>) attributes {dimension_semantics = [#tpu.dimension_semantics<arbitrary>], iteration_bounds = array<i64: 1>, scalar_prefetch = 0 : i64, scratch_operands = 0 : i64, tpu.core_type = #tpu.core_type<tc>, window_params = [{pipeline_mode = #tpu.pipeline_mode<synchronous>, transform_indices = @transform_0, window_bounds = array<i64: 2, 32>}, {pipeline_mode = #tpu.pipeline_mode<synchronous>, transform_indices = @transform_1, window_bounds = array<i64: 32, 32>}, {pipeline_mode = #tpu.pipeline_mode<synchronous>, transform_indices = @transform_2, window_bounds = array<i64: 1, 32>}, {pipeline_mode = #tpu.pipeline_mode<synchronous>, transform_indices = @transform_3, window_bounds = array<i64: 32, 3>}, {pipeline_mode = #tpu.pipeline_mode<synchronous>, transform_indices = @transform_4, window_bounds = array<i64: 1, 3>}, {pipeline_mode = #tpu.pipeline_mode<synchronous>, transform_indices = @transform_5, window_bounds = array<i64: 2, 3>}]} {
    %c0 = arith.constant 0 : index
    %c0_0 = arith.constant 0 : index
    %0 = vector.load %arg1[%c0, %c0_0] : memref<2x32xbf16, #tpu.memory_space<vmem>>, vector<2x32xbf16>
    %c0_1 = arith.constant 0 : index
    %c0_2 = arith.constant 0 : index
    %1 = vector.load %arg2[%c0_1, %c0_2] : memref<32x32xbf16, #tpu.memory_space<vmem>>, vector<32x32xbf16>
    %cst = arith.constant dense<0.000000e+00> : vector<2x32xf32>
    %2 = tpu.matmul %0, %1, %cst {dimension_numbers = #tpu.dot_dimension_numbers<[1], [0], [0], [1], [0, 0, 1, 1], [], []>} : vector<2x32xbf16>, vector<32x32xbf16>, vector<2x32xf32> -> vector<2x32xf32>
    %c0_3 = arith.constant 0 : index
    %c0_4 = arith.constant 0 : index
    %3 = vector.load %arg3[%c0_3, %c0_4] : memref<1x32xf32, #tpu.memory_space<vmem>>, vector<1x32xf32>
    %4 = vector.broadcast %3 : vector<1x32xf32> to vector<2x32xf32>
    %5 = arith.addf %2, %4 : vector<2x32xf32>
    %6 = math.tanh %5 : vector<2x32xf32>
    %7 = arith.truncf %6 : vector<2x32xf32> to vector<2x32xbf16>
    %c0_5 = arith.constant 0 : index
    %c0_6 = arith.constant 0 : index
    %8 = vector.load %arg4[%c0_5, %c0_6] : memref<32x3xbf16, #tpu.memory_space<vmem>>, vector<32x3xbf16>
    %cst_7 = arith.constant dense<0.000000e+00> : vector<2x3xf32>
    %9 = tpu.matmul %7, %8, %cst_7 {dimension_numbers = #tpu.dot_dimension_numbers<[1], [0], [0], [1], [0, 0, 1, 1], [], []>} : vector<2x32xbf16>, vector<32x3xbf16>, vector<2x3xf32> -> vector<2x3xf32>
    %c0_8 = arith.constant 0 : index
    %c0_9 = arith.constant 0 : index
    %10 = vector.load %arg5[%c0_8, %c0_9] : memref<1x3xf32, #tpu.memory_space<vmem>>, vector<1x3xf32>
    %11 = vector.broadcast %10 : vector<1x3xf32> to vector<2x3xf32>
    %12 = arith.addf %9, %11 : vector<2x3xf32>
    %c0_10 = arith.constant 0 : index
    %c0_11 = arith.constant 0 : index
    %13 = vector.load %arg6[%c0_10, %c0_11] : memref<2x3xf32, #tpu.memory_space<vmem>>, vector<2x3xf32>
    tpu.vector_store %arg6[%c0_10, %c0_11], %12 {strides = array<i32>} : memref<2x3xf32, #tpu.memory_space<vmem>>, vector<2x3xf32>,
    return
  }
  func.func @transform_0(%arg0: i32) -> (i32, i32) {
    %c0_i32 = arith.constant 0 : i32
    %c0_i32_0 = arith.constant 0 : i32
    %c0_i32_1 = arith.constant 0 : i32
    return %c0_i32, %c0_i32_0 : i32, i32
  }
  func.func @transform_1(%arg0: i32) -> (i32, i32) {
    %c0_i32 = arith.constant 0 : i32
    %c0_i32_0 = arith.constant 0 : i32
    %c0_i32_1 = arith.constant 0 : i32
    return %c0_i32, %c0_i32_0 : i32, i32
  }
  func.func @transform_2(%arg0: i32) -> (i32, i32) {
    %c0_i32 = arith.constant 0 : i32
    %c0_i32_0 = arith.constant 0 : i32
    %c0_i32_1 = arith.constant 0 : i32
    return %c0_i32, %c0_i32_0 : i32, i32
  }
  func.func @transform_3(%arg0: i32) -> (i32, i32) {
    %c0_i32 = arith.constant 0 : i32
    %c0_i32_0 = arith.constant 0 : i32
    %c0_i32_1 = arith.constant 0 : i32
    return %c0_i32, %c0_i32_0 : i32, i32
  }
  func.func @transform_4(%arg0: i32) -> (i32, i32) {
    %c0_i32 = arith.constant 0 : i32
    %c0_i32_0 = arith.constant 0 : i32
    %c0_i32_1 = arith.constant 0 : i32
    return %c0_i32, %c0_i32_0 : i32, i32
  }
  func.func @transform_5(%arg0: i32) -> (i32, i32) {
    %c0_i32 = arith.constant 0 : i32
    %c0_i32_0 = arith.constant 0 : i32
    %c0_i32_1 = arith.constant 0 : i32
    return %c0_i32, %c0_i32_0 : i32, i32
  }
}

</mosaic_0001>

<bundles_post_ra>
// kernel: bert_classifier_forward.10
= control target key start
LH: loop header
LB: loop body
LE: loop exit
PB: predicated region body
PF: predicated region fallthrough
CT: control target
= control target key end

     0   :  { %vm16_vm0 = vcmask 261120   ;;  %v98_v4 = vmov 32.0   ;;  %vm82_vm6 = vcmask 257024   ;;  %s141_s0 = inlined_call_operand.vmem [shape: f32[16,32], index: 0, kind: input, shape index: {}]   ;;  %s142_s1 = inlined_call_operand.vmem [shape: f32[1,32], index: 1, kind: input, shape index: {}]   ;;  %s143_s2 = inlined_call_operand.vmem [shape: f32[1,32], index: 2, kind: input, shape index: {}]   ;;  %s144_s3 = inlined_call_operand.vmem [shape: bf16[16,32], index: 3, kind: output, shape index: {}]  }
   0x1   :  { %v14_v0 = vld [vmem:[%s141_s0] sm:$0xff]  ;;  %v15_v2 = vld [vmem:[%s141_s0 + $0x8] sm:$0xff]  ;;  %92 = vrcp.f32 %v98_v4 }
   0x2   :  { %v17_v1 = vsel %vm16_vm0, %v14_v0, 0.0  ;;  %v20_v3 = vsel %vm16_vm0, %v15_v2, 0.0  ;;  %v90_v35 = vld [vmem:[%s142_s1] ss:$0 sm:$0xff] }
   0x3   :  { %18 = vadd.xlane.f32.xlu0 %v17_v1  ;;  %v91_v38 = vld [vmem:[%s143_s2] ss:$0 sm:$0xff] }
   0x7   :  { %v93_v5 = vpop.eup %92 }
   0x8   :  { %v24_v6 = vmul.f32 32.0, %v93_v5  ;;  %vm28_vm1 = vweird.f32 %v93_v5 }
   0xa   :  { %v25_v7 = vsub.f32 1.0, %v24_v6 }
   0xb   :  { %21 = vadd.xlane.f32.xlu0 %v20_v3 }
   0xc   :  { %v26_v8 = vmul.f32 %v93_v5, %v25_v7 }
   0xe   :  { %v27_v9 = vadd.f32 %v93_v5, %v26_v8 }
  0x10   :  { %v29_v10 = vsel %vm28_vm1, %v93_v5, %v27_v9 }
  0x76   :  { %v19_v11 = vpop.xlane.xlu0 %18 }
  0x77   :  { %v30_v12 = vmul.f32 %v29_v10, %v19_v11 }
  0x79   :  { %v32_v13 = vsub.f32 %v14_v0, %v30_v12 }
  0x7b   :  { %v34_v14 = vmul.f32 %v32_v13, %v32_v13 }
  0x7d   :  { %v36_v15 = vsel %vm16_vm0, %v34_v14, 0.0 }
  0x7e   :  { %37 = vadd.xlane.f32.xlu1 %v36_v15  ;;  %v22_v16 = vpop.xlane.xlu0 %21 }
  0x7f   :  { %v31_v17 = vmul.f32 %v29_v10, %v22_v16 }
  0x81   :  { %v33_v18 = vsub.f32 %v15_v2, %v31_v17 }
  0x83   :  { %v35_v19 = vmul.f32 %v33_v18, %v33_v18 }
  0x85   :  { %v39_v20 = vsel %vm16_vm0, %v35_v19, 0.0 }
  0x86   :  { %40 = vadd.xlane.f32.xlu1 %v39_v20 }
  0xf1   :  { %v38_v21 = vpop.xlane.xlu1 %37 }
  0xf2   :  { %v42_v22 = vmul.f32 %v38_v21, %v29_v10 }
  0xf4   :  { %v44_v23 = vadd.f32 1e-12, %v42_v22 }
  0xf6   :  { %94 = vrsqrt.f32 %v44_v23  ;;  %vm52_vm3 = vweird.f32 %v44_v23 }
  0xf9   :  { %v41_v24 = vpop.xlane.xlu1 %40 }
  0xfa   :  { %v43_v25 = vmul.f32 %v41_v24, %v29_v10 }
  0xfc   :  { %v95_v26 = vpop.eup %94  ;;  %v45_v27 = vadd.f32 1e-12, %v43_v25 }
  0xfd   :  { %v47_v28 = vmul.f32 %v95_v26, %v44_v23  ;;  %vm53_vm2 = vweird.f32 %v95_v26 }
  0xfe   :  { %96 = vrsqrt.f32 %v45_v27  ;;  %vm54_vm4 = vmor %vm52_vm3, %vm53_vm2  ;;  %vm62_vm7 = vweird.f32 %v45_v27 }
  0xff   :  { %v48_v29 = vmul.f32 %v95_v26, %v47_v28 }
 0x101   :  { %v49_v30 = vmul.f32 0.5, %v48_v29 }
 0x103   :  { %v50_v31 = vsub.f32 1.5, %v49_v30 }
 0x104   :  { %v97_v32 = vpop.eup %96 }
 0x105   :  { %v51_v33 = vmul.f32 %v95_v26, %v50_v31  ;;  %v57_v34 = vmul.f32 %v97_v32, %v45_v27  ;;  %vm63_vm5 = vweird.f32 %v97_v32 }
 0x106   :  { %vm64_vm8 = vmor %vm62_vm7, %vm63_vm5 }
 0x107   :  { %v55_v36 = vsel %vm54_vm4, %v95_v26, %v51_v33  ;;  %v58_v37 = vmul.f32 %v97_v32, %v57_v34 }
 0x108   :  { %v66_v39 = vmul.f32 %v55_v36, %v32_v13 }
 0x109   :  { %v59_v40 = vmul.f32 0.5, %v58_v37 }
 0x10a   :  { %v72_v41 = vmul.f32 %v90_v35, %v66_v39 }
 0x10b   :  { %v60_v42 = vsub.f32 1.5, %v59_v40 }
 0x10c   :  { %v78_v43 = vadd.f32 %v91_v38, %v72_v41 }
 0x10d   :  { %v61_v44 = vmul.f32 %v97_v32, %v60_v42 }
 0x10e   :  { %v80_v45 = vpack.c.bf16 %v78_v43, %v78_v43 }
 0x10f   :  { %v65_v46 = vsel %vm64_vm8, %v97_v32, %v61_v44 }
 0x110   :  { %83 = vst.msk [vmem:[%s144_s3] sm:$0xf] %vm82_vm6, %v80_v45  ;;  %v67_v47 = vmul.f32 %v65_v46, %v33_v18 }
 0x112   :  { %v73_v48 = vmul.f32 %v90_v35, %v67_v47 }
 0x114   :  { %v79_v49 = vadd.f32 %v91_v38, %v73_v48 }
 0x116   :  { %v81_v50 = vpack.c.bf16 %v79_v49, %v79_v49 }
 0x118   :  { %84 = vst.msk [vmem:[%s144_s3 + $0x4] sm:$0xf] %vm82_vm6, %v81_v50 }

// kernel: bert_classifier_forward.12
= control target key start
LH: loop header
LB: loop body
LE: loop exit
PB: predicated region body
PF: predicated region fallthrough
CT: control target
= control target key end

     0   :  { %vm28_vm0 = vcmask 261120   ;;  %v198_v1 = vmov 0.0   ;;  %v199_v22 = vmov 32.0   ;;  %vm160_vm6 = vcmask 257024   ;;  %s271_s1 = inlined_call_operand.vmem [shape: bf16[32,32], index: 1, kind: input, shape index: {}]   ;;  %s272_s0 = inlined_call_operand.vmem [shape: bf16[16,32], index: 0, kind: input, shape index: {}]   ;;  %s273_s2 = inlined_call_operand.vmem [shape: f32[1,32], index: 2, kind: input, shape index: {}]   ;;  %s274_s3 = inlined_call_operand.vmem [shape: bf16[16,32], index: 3, kind: input, shape index: {}]   ;;  %s275_s4 = inlined_call_operand.vmem [shape: f32[1,32], index: 4, kind: input, shape index: {}]   ;;  %s276_s5 = inlined_call_operand.vmem [shape: f32[1,32], index: 5, kind: input, shape index: {}]   ;;  %s277_s6 = inlined_call_operand.vmem [shape: bf16[16,32], index: 6, kind: output, shape index: {}]  }
   0x1   :  { %v182_v0 = vld [vmem:[%s271_s1 + $0x8] sm:$0xff]  ;;  %29 = vst.msk [vmem:[#allocation2] sm:$0xff] %vm28_vm0, %v198_v1  ;;  %v181_v2 = vld [vmem:[%s271_s1] sm:$0xff]  ;;  %192 = vrcp.f32 %v199_v22 }
   0x2   :  { %30 = vst.msk [vmem:[#allocation2 + $0x8] sm:$0xff] %vm28_vm0, %v198_v1  ;;  %66 = vmatpush.bf16.msra.mxu0 %v182_v0  ;;  %v180_v3 = vld [vmem:[%s272_s0] sm:$0xff] }
   0x3   :  { %v184_v8 = vld [vmem:[%s274_s3] sm:$0xff]  }
   0x4   :  { %v189_v9 = vld [vmem:[%s273_s2] ss:$0 sm:$0xff]  ;;  %v185_v12 = vunpack.c.l.bf16 %v184_v8  ;;  %v186_v17 = vunpack.c.h.bf16 %v184_v8 }
   0x5   :  { %v190_v53 = vld [vmem:[%s275_s4] ss:$0 sm:$0xff] }
   0x6   :  { %67 = vmatpush.bf16.msra.mxu0 %v181_v2  ;;  %v191_v56 = vld [vmem:[%s276_s5] ss:$0 sm:$0xff] }
   0x7   :  { %v193_v23 = vpop.eup %192 }
   0x8   :  { %v31_v4 = vld [vmem:[#allocation2] sm:$0xff]  ;;  %v102_v24 = vmul.f32 32.0, %v193_v23  ;;  %vm106_vm1 = vweird.f32 %v193_v23 }
   0x9   :  { %179 = vmatmul.msk.bf16.vlgmr.msra.gmra.mxu0 %vm28_vm0, %v180_v3  ;;  %v32_v7 = vld [vmem:[#allocation2 + $0x8] sm:$0xff] }
   0xa   :  { %v103_v25 = vsub.f32 1.0, %v102_v24 }
   0xc   :  { %v104_v26 = vmul.f32 %v193_v23, %v103_v25 }
   0xe   :  { %v105_v27 = vadd.f32 %v193_v23, %v104_v26 }
  0x10   :  { %v107_v28 = vsel %vm106_vm1, %v193_v23, %v105_v27 }
  0x86   :  { %v69_v5 = vpop.f32.mrf.mxu0 }
  0x87   :  { %v74_v6 = vadd.f32 %v69_v5, %v31_v4 }
  0x89   :  { %76 = vst.msk [vmem:[#allocation2] sm:$0xff] %vm28_vm0, %v74_v6 }
  0x8e   :  { %v71_v10 = vpop.f32.mrf.mxu0 }
  0x8f   :  { %v75_v11 = vadd.f32 %v71_v10, %v32_v7 }
  0x90   :  { %v81_v13 = vld [vmem:[#allocation2] sm:$0xff] }
  0x91   :  { %77 = vst.msk [vmem:[#allocation2 + $0x8] sm:$0xff] %vm28_vm0, %v75_v11  ;;  %v87_v14 = vadd.f32 %v189_v9, %v81_v13 }
  0x93   :  { %v93_v15 = vadd.f32 %v185_v12, %v87_v14 }
  0x95   :  { %v95_v16 = vsel %vm28_vm0, %v93_v15, 0.0 }
  0x96   :  { %96 = vadd.xlane.f32.xlu0 %v95_v16 }
  0x98   :  { %v82_v18 = vld [vmem:[#allocation2 + $0x8] sm:$0xff] }
  0x99   :  { %v88_v19 = vadd.f32 %v189_v9, %v82_v18 }
  0x9b   :  { %v94_v20 = vadd.f32 %v186_v17, %v88_v19 }
  0x9d   :  { %v98_v21 = vsel %vm28_vm0, %v94_v20, 0.0 }
  0x9e   :  { %99 = vadd.xlane.f32.xlu0 %v98_v21 }
 0x109   :  { %v97_v29 = vpop.xlane.xlu0 %96 }
 0x10a   :  { %v108_v30 = vmul.f32 %v107_v28, %v97_v29 }
 0x10c   :  { %v110_v31 = vsub.f32 %v93_v15, %v108_v30 }
 0x10e   :  { %v112_v32 = vmul.f32 %v110_v31, %v110_v31 }
 0x110   :  { %v114_v33 = vsel %vm28_vm0, %v112_v32, 0.0 }
 0x111   :  { %115 = vadd.xlane.f32.xlu1 %v114_v33  ;;  %v100_v34 = vpop.xlane.xlu0 %99 }
 0x112   :  { %v109_v35 = vmul.f32 %v107_v28, %v100_v34 }
 0x114   :  { %v111_v36 = vsub.f32 %v94_v20, %v109_v35 }
 0x116   :  { %v113_v37 = vmul.f32 %v111_v36, %v111_v36 }
 0x118   :  { %v117_v38 = vsel %vm28_vm0, %v113_v37, 0.0 }
 0x119   :  { %118 = vadd.xlane.f32.xlu1 %v117_v38 }
 0x184   :  { %v116_v39 = vpop.xlane.xlu1 %115 }
 0x185   :  { %v120_v40 = vmul.f32 %v116_v39, %v107_v28 }
 0x187   :  { %v122_v41 = vadd.f32 1e-12, %v120_v40 }
 0x189   :  { %194 = vrsqrt.f32 %v122_v41  ;;  %vm130_vm3 = vweird.f32 %v122_v41 }
 0x18c   :  { %v119_v42 = vpop.xlane.xlu1 %118 }
 0x18d   :  { %v121_v43 = vmul.f32 %v119_v42, %v107_v28 }
 0x18f   :  { %v195_v44 = vpop.eup %194  ;;  %v123_v45 = vadd.f32 1e-12, %v121_v43 }
 0x190   :  { %v125_v46 = vmul.f32 %v195_v44, %v122_v41  ;;  %vm131_vm2 = vweird.f32 %v195_v44 }
 0x191   :  { %196 = vrsqrt.f32 %v123_v45  ;;  %vm132_vm4 = vmor %vm130_vm3, %vm131_vm2  ;;  %vm140_vm7 = vweird.f32 %v123_v45 }
 0x192   :  { %v126_v47 = vmul.f32 %v195_v44, %v125_v46 }
 0x194   :  { %v127_v48 = vmul.f32 0.5, %v126_v47 }
 0x196   :  { %v128_v49 = vsub.f32 1.5, %v127_v48 }
 0x197   :  { %v197_v50 = vpop.eup %196 }
 0x198   :  { %v129_v51 = vmul.f32 %v195_v44, %v128_v49  ;;  %v135_v52 = vmul.f32 %v197_v50, %v123_v45  ;;  %vm141_vm5 = vweird.f32 %v197_v50 }
 0x199   :  { %vm142_vm8 = vmor %vm140_vm7, %vm141_vm5 }
 0x19a   :  { %v133_v54 = vsel %vm132_vm4, %v195_v44, %v129_v51  ;;  %v136_v55 = vmul.f32 %v197_v50, %v135_v52 }
 0x19b   :  { %v144_v57 = vmul.f32 %v133_v54, %v110_v31 }
 0x19c   :  { %v137_v58 = vmul.f32 0.5, %v136_v55 }
 0x19d   :  { %v150_v59 = vmul.f32 %v190_v53, %v144_v57 }
 0x19e   :  { %v138_v60 = vsub.f32 1.5, %v137_v58 }
 0x19f   :  { %v156_v61 = vadd.f32 %v191_v56, %v150_v59 }
 0x1a0   :  { %v139_v62 = vmul.f32 %v197_v50, %v138_v60 }
 0x1a1   :  { %v158_v63 = vpack.c.bf16 %v156_v61, %v156_v61 }
 0x1a2   :  { %v143_v0 = vsel %vm142_vm8, %v197_v50, %v139_v62 }
 0x1a3   :  { %161 = vst.msk [vmem:[%s277_s6] sm:$0xf] %vm160_vm6, %v158_v63  ;;  %v145_v1 = vmul.f32 %v143_v0, %v111_v36 }
 0x1a5   :  { %v151_v2 = vmul.f32 %v190_v53, %v145_v1 }
 0x1a7   :  { %v157_v3 = vadd.f32 %v191_v56, %v151_v2 }
 0x1a9   :  { %v159_v4 = vpack.c.bf16 %v157_v3, %v157_v3 }
 0x1ab   :  { %162 = vst.msk [vmem:[%s277_s6 + $0x4] sm:$0xf] %vm160_vm6, %v159_v4 }

// kernel: bert_classifier_forward.11
= control target key start
LH: loop header
LB: loop body
LE: loop exit
PB: predicated region body
PF: predicated region fallthrough
CT: control target
= control target key end

     0   :  { %s528_s15 = smov 0   ;;  %s576_s0 = inlined_call_operand.vmem [shape: bf16[16,32], index: 0, kind: input, shape index: {}]   ;;  %s577_s1 = inlined_call_operand.vmem [shape: bf16[32,96], index: 1, kind: input, shape index: {}]   ;;  %s578_s2 = inlined_call_operand.vmem [shape: f32[1,96], index: 2, kind: input, shape index: {}]   ;;  %s579_s3 = inlined_call_operand.vmem [shape: f32[2,1,8], index: 3, kind: input, shape index: {}]   ;;  %s580_s4 = inlined_call_operand.vmem [shape: bf16[16,32], index: 4, kind: output, shape index: {}]  }
   0x1 LB: > { %s441_s16 = sadd.s32 4294967295, %s495_s15   ;;  %p445_p0 = scmp.ge.s32.totalorder %s495_s15, 1  ;;  %s495_s15 = sphi %s528_s15, %s14_s15  }
   0x2   : > { %p169_p1 = scmp.lt.s32.totalorder %s495_s15, 3 }
   0x4   : > { %p170_p2 = pnand %p445_p0, %p169_p1 }
   0x5   : > { %p196_p3 = scmp.lt.s32.totalorder (!%p170_p2), %s441_s16, 1  ;;  %s497_s27 = smov (!%p170_p2), 112  }
   0x6   : > { %173 = sbr.rel (%p170_p2) target bundleno = 905 (0x389), region = 36  ;;  %s498_s28 = smov (!%p170_p2), 96  }
   0x7   : > { %s499_s29 = smov (!%p170_p2), 80   ;;  %s500_s30 = smov (!%p170_p2), 64  }
   0x8   : > { %s501_s5 = smov (!%p170_p2), 48   ;;  %s502_s9 = smov (!%p170_p2), 16  }
   0xb   : > { %v464_v0 = vld [vmem:[%s577_s1 + $0x8] sm:$0xff]  ;;  %v463_v1 = vld [vmem:[%s577_s1] sm:$0xff]  ;;  %s582_s16 = smov (!%p196_p3, %s441_s16), 1  ;;  %vm229_vm0 = vcmask 261120   ;;  %vm253_vm1 = vcmask 130048   ;;  %vm296_vm2 = vcmask 1043456  }
   0xc   : > { %239 = vmatpush.bf16.msra.mxu0 %v464_v0  ;;  %s446_s21 = sshll.u32 %s582_s16, 2  ;;  %v479_v3 = vld [vmem:[%s578_s2] ss:$0 sm:$0xff]  ;;  %s202_s8 = scalar_lea.vmem %s579_s3, %s582_s16  ;;  %vm278_vm3 = vcmask 64512   ;;  %vm377_vm4 = vcmask 257024  }
   0xd   : > { %s199_s24 = scalar_lea.vmem %s576_s0, %s446_s21  ;;  %v480_v19 = vld [vmem:[%s202_s8] ss:$0 sm:$0xff]  ;;  %s206_s12 = scalar_lea.vmem %s580_s4, %s446_s21 }
   0xe   : > { %v208_v2 = vld [vmem:[%s199_s24] sm:$0xf] }
  0x10   : > { %240 = vmatpush.bf16.msra.mxu0 %v463_v1 }
  0x13   : > { %456 = vmatmul.msk.bf16.vlgmr.msra.gmra.mxu0 %vm229_vm0, %v208_v2 }
  0x90   : > { %v242_v4 = vpop.f32.mrf.mxu0 }
  0x91   : > { %v243_v5 = vadd.f32 %v479_v3, %v242_v4 }
  0x93   : > { %v246_v6 = vpack.c.bf16 %v243_v5, %v243_v5 }
  0x95   : > { %v249_v7 = vunpack.c.l.b16 %v246_v6 }
  0x97   : > { %v250_v8 = vpack.c.b16 %v249_v7, %v249_v7 }
  0x98   : > { %v244_v9 = vpop.f32.mrf.mxu0 }
  0x99   : > { %313 = vrot.lane.b32.xlu1 %v250_v8, %s497_s27  ;;  %251 = vrot.lane.b32.xlu0 %v250_v8, %s498_s28 }
  0xa1   : > { %315 = vrot.lane.b32.xlu0 %v250_v8, %s499_s29 }
  0xa9   : > { %291 = vrot.lane.b32.xlu0 %v250_v8, %s500_s30 }
  0xb1   : > { %350 = vrot.lane.b32.xlu0 %v250_v8, %s501_s5 }
 0x10b   : > { %v252_v10 = vpop.permute.xlu0 %251  ;;  %v314_v14 = vpop.permute.xlu1 %313 }
 0x10c   : > { %v258_v11 = vsel %vm253_vm1, %v252_v10, 0 }
 0x10d   : > { %267 = vmatpush.bf16.xpose.msra.mxu1 %v258_v11 }
 0x113   : > { %v316_v12 = vpop.permute.xlu0 %315 }
 0x114   : > { %457 = vmatmul.msk.bf16.vlgmr.msra.gmra.mxu1 %vm253_vm1, %v246_v6  ;;  %v321_v13 = vsel %vm253_vm1, %v316_v12, 0 }
 0x115   : > { %330 = vmatpush.bf16.xpose.msra.mxu3 %v321_v13 }
 0x11b   : > { %v292_v15 = vpop.permute.xlu0 %291 }
 0x11c   : > { %459 = vmatmul.msk.bf16.vlgmr.msra.gmra.mxu3 %vm253_vm1, %v314_v14  ;;  %v298_v16 = vsel %vm296_vm2, %v292_v15, 0 }
 0x11d   : > { %307 = vmatpush.bf16.msra.mxu2 %v298_v16 }
 0x123   : > { %v351_v17 = vpop.permute.xlu0 %350 }
 0x124   : > { %v356_v18 = vsel %vm296_vm2, %v351_v17, 0 }
 0x125   : > { %365 = vmatpush.bf16.msrb.mxu2 %v356_v18 }
 0x191   : > { %v269_v20 = vpop.f32.mrf.mxu1 }
 0x192   : > { %v273_v21 = vmul.f32 0.25, %v269_v20 }
 0x194   : > { %v277_v22 = vadd.f32 %v480_v19, %v273_v21 }
 0x196   : > { %v279_v23 = vsel %vm278_vm3, %v277_v22, -inf }
 0x197   : > { %280 = vmax.xlane.f32.xlu1 %v279_v23 }
 0x199   : > { %v271_v24 = vpop.f32.mrf.mxu1 }
 0x19f   : > { %v332_v25 = vpop.f32.mrf.mxu3 }
 0x1a0   : > { %v336_v26 = vmul.f32 0.25, %v332_v25 }
 0x1a2   : > { %v337_v27 = vadd.f32 %v480_v19, %v336_v26 }
 0x1a4   : > { %v338_v28 = vsel %vm278_vm3, %v337_v27, -inf }
 0x1a5   : > { %339 = vmax.xlane.f32.xlu2 %v338_v28 }
 0x1a7   : > { %v334_v29 = vpop.f32.mrf.mxu3 }
 0x20a   : > { %v281_v30 = vpop.xlane.xlu1 %280 }
 0x20b   : > { %v282_v31 = vsub.f32 %v277_v22, %v281_v30 }
 0x20d   : > { %v283_v32 = vmul.f32 1.442695, %v282_v31 }
 0x20f   : > { %481 = vpow2.f32 %v283_v32 }
 0x215   : > { %v482_v33 = vpop.eup %481 }
 0x216   : > { %v285_v34 = vsel %vm278_vm3, %v482_v33, 0.0 }
 0x217   : > { %286 = vadd.xlane.f32.xlu2 %v285_v34 }
 0x218   : > { %v340_v35 = vpop.xlane.xlu2 %339 }
 0x219   : > { %v341_v36 = vsub.f32 %v337_v27, %v340_v35 }
 0x21b   : > { %v342_v37 = vmul.f32 1.442695, %v341_v36 }
 0x21d   : > { %483 = vpow2.f32 %v342_v37 }
 0x223   : > { %v484_v38 = vpop.eup %483 }
 0x224   : > { %v344_v39 = vsel %vm278_vm3, %v484_v38, 0.0 }
 0x225   : > { %345 = vadd.xlane.f32.xlu2 %v344_v39 }
 0x28a   : > { %v287_v40 = vpop.xlane.xlu2 %286 }
 0x28b   : > { %485 = vrcp.f32 %v287_v40 }
 0x291   : > { %v486_v41 = vpop.eup %485 }
 0x292   : > { %v289_v42 = vmul.f32 %v486_v41, %v482_v33 }
 0x294   : > { %v290_v43 = vpack.c.bf16 %v289_v42, %v289_v42 }
 0x296   : > { %458 = vmatmul.msk.bf16.vlgmr.msra.gmra.mxu2 %vm278_vm3, %v290_v43 }
 0x298   : > { %v346_v44 = vpop.xlane.xlu2 %345 }
 0x299   : > { %487 = vrcp.f32 %v346_v44 }
 0x29f   : > { %v488_v45 = vpop.eup %487 }
 0x2a0   : > { %v348_v46 = vmul.f32 %v488_v45, %v484_v38 }
 0x2a2   : > { %v349_v47 = vpack.c.bf16 %v348_v46, %v348_v46 }
 0x2a6   : > { %460 = vmatmul.msk.bf16.vlgmr.msrb.gmra.mxu2 %vm278_vm3, %v349_v47 }
 0x319   : > { %v309_v48 = vpop.f32.mrf.mxu2 }
 0x321   : > { %v311_v49 = vpop.f32.mrf.mxu2 }
 0x329   : > { %v367_v50 = vpop.f32.mrf.mxu2 }
 0x32a   : > { %372 = vrot.lane.b32.xlu2 %v367_v50, %s502_s9 }
 0x331   : > { %v369_v51 = vpop.f32.mrf.mxu2 }
 0x384   : > { %v373_v52 = vpop.permute.xlu2 %372 }
 0x385   : > { %v375_v53 = vsel %vm253_vm1, %v309_v48, %v373_v52 }
 0x386   : > { %v376_v54 = vpack.c.bf16 %v375_v53, %v375_v53 }
 0x388   : > { %378 = vst.msk [vmem:[%s206_s12] sm:$0xf] %vm377_vm4, %v376_v54 }
 0x389 PF: > { %s14_s15 = sadd.s32 1, %s495_s15  }
 0x38a   : > { %p11_p4 = scmp.ge.s32.totalorder %s14_s15, 4  }
 0x38c   :  { %13 = sbr.rel (!%p11_p4) target bundleno = 1 (0x1), region = 69 }

// kernel: bert_classifier_forward.13
= control target key start
LH: loop header
LB: loop body
LE: loop exit
PB: predicated region body
PF: predicated region fallthrough
CT: control target
= control target key end

     0   :  { %vm19_vm0 = vcmask 523264   ;;  %v130_v1 = vmov 0.0   ;;  %vm47_vm1 = vcmask 261120   ;;  %vm101_vm2 = vcmask 519168   ;;  %s173_s1 = inlined_call_operand.vmem [shape: bf16[32,64], index: 1, kind: input, shape index: {}]   ;;  %s174_s2 = inlined_call_operand.vmem [shape: f32[1,64], index: 2, kind: input, shape index: {}]   ;;  %s175_s0 = inlined_call_operand.vmem [shape: bf16[16,32], index: 0, kind: input, shape index: {}]   ;;  %s176_s3 = inlined_call_operand.vmem [shape: bf16[16,64], index: 3, kind: output, shape index: {}]  }
   0x1   :  { %v123_v0 = vld [vmem:[%s173_s1 + $0x8] sm:$0xff]  ;;  %20 = vst.msk [vmem:[#allocation2] sm:$0xff] %vm19_vm0, %v130_v1  ;;  %v122_v2 = vld [vmem:[%s173_s1] sm:$0xff] }
   0x2   :  { %21 = vst.msk [vmem:[#allocation2 + $0x8] sm:$0xff] %vm19_vm0, %v130_v1  ;;  %57 = vmatpush.bf16.msra.mxu0 %v123_v0  ;;  %v121_v3 = vld [vmem:[%s175_s0] sm:$0xff] }
   0x3   :  { %v125_v8 = vld [vmem:[%s174_s2] ss:$0 sm:$0xff] }
   0x6   :  { %58 = vmatpush.bf16.msra.mxu0 %v122_v2 }
   0x8   :  { %v22_v4 = vld [vmem:[#allocation2] sm:$0xff] }
   0x9   :  { %120 = vmatmul.msk.bf16.vlgmr.msra.gmra.mxu0 %vm47_vm1, %v121_v3  ;;  %v23_v7 = vld [vmem:[#allocation2 + $0x8] sm:$0xff] }
  0x86   :  { %v60_v5 = vpop.f32.mrf.mxu0 }
  0x87   :  { %v65_v6 = vadd.f32 %v60_v5, %v22_v4 }
  0x89   :  { %68 = vst.msk [vmem:[#allocation2] sm:$0xff] %vm19_vm0, %v65_v6 }
  0x8e   :  { %v62_v9 = vpop.f32.mrf.mxu0 }
  0x8f   :  { %v66_v10 = vadd.f32 %v62_v9, %v23_v7 }
  0x90   :  { %v73_v11 = vld [vmem:[#allocation2] sm:$0xff] }
  0x91   :  { %v79_v12 = vadd.f32 %v125_v8, %v73_v11  ;;  %69 = vst.msk [vmem:[#allocation2 + $0x8] sm:$0xff] %vm19_vm0, %v66_v10 }
  0x93   :  { %v81_v13 = vmul.f32 %v79_v12, %v79_v12 }
  0x95   :  { %v83_v14 = vmul.f32 %v81_v13, %v79_v12 }
  0x97   :  { %v85_v15 = vmul.f32 0.044715, %v83_v14 }
  0x98   :  { %v74_v16 = vld [vmem:[#allocation2 + $0x8] sm:$0xff] }
  0x99   :  { %v87_v17 = vadd.f32 %v85_v15, %v79_v12  ;;  %v80_v18 = vadd.f32 %v125_v8, %v74_v16 }
  0x9b   :  { %v89_v19 = vmul.f32 0.7978846, %v87_v17  ;;  %v82_v20 = vmul.f32 %v80_v18, %v80_v18 }
  0x9d   :  { %126 = vtanh.f32 %v89_v19  ;;  %v84_v21 = vmul.f32 %v82_v20, %v80_v18 }
  0x9f   :  { %v86_v22 = vmul.f32 0.044715, %v84_v21 }
  0xa1   :  { %v88_v23 = vadd.f32 %v86_v22, %v80_v18 }
  0xa3   :  { %v127_v24 = vpop.eup %126  ;;  %v90_v25 = vmul.f32 0.7978846, %v88_v23 }
  0xa4   :  { %v93_v26 = vadd.f32 1.0, %v127_v24 }
  0xa5   :  { %128 = vtanh.f32 %v90_v25 }
  0xa6   :  { %v95_v27 = vmul.f32 0.5, %v93_v26 }
  0xa8   :  { %v97_v28 = vmul.f32 %v95_v27, %v79_v12 }
  0xaa   :  { %v99_v29 = vpack.c.bf16 %v97_v28, %v97_v28 }
  0xab   :  { %v129_v30 = vpop.eup %128 }
  0xac   :  { %102 = vst.msk [vmem:[%s176_s3] sm:$0xf] %vm101_vm2, %v99_v29  ;;  %v94_v31 = vadd.f32 1.0, %v129_v30 }
  0xae   :  { %v96_v32 = vmul.f32 0.5, %v94_v31 }
  0xb0   :  { %v98_v33 = vmul.f32 %v96_v32, %v80_v18 }
  0xb2   :  { %v100_v34 = vpack.c.bf16 %v98_v33, %v98_v33 }
  0xb4   :  { %103 = vst.msk [vmem:[%s176_s3 + $0x4] sm:$0xf] %vm101_vm2, %v100_v34 }

// kernel: bert_classifier_forward.14
= control target key start
LH: loop header
LB: loop body
LE: loop exit
PB: predicated region body
PF: predicated region fallthrough
CT: control target
= control target key end

     0   :  { %vm28_vm0 = vcmask 261120   ;;  %v225_v1 = vmov 0.0   ;;  %vm72_vm1 = vcmask 523264   ;;  %v226_v24 = vmov 32.0   ;;  %s303_s1 = inlined_call_operand.vmem [shape: bf16[64,32], index: 1, kind: input, shape index: {}]   ;;  %s304_s0 = inlined_call_operand.vmem [shape: bf16[16,64], index: 0, kind: input, shape index: {}]   ;;  %s305_s2 = inlined_call_operand.vmem [shape: f32[1,32], index: 2, kind: input, shape index: {}]   ;;  %s306_s3 = inlined_call_operand.vmem [shape: bf16[16,32], index: 3, kind: input, shape index: {}]   ;;  %s307_s4 = inlined_call_operand.vmem [shape: f32[1,32], index: 4, kind: input, shape index: {}]   ;;  %s308_s5 = inlined_call_operand.vmem [shape: f32[1,32], index: 5, kind: input, shape index: {}]   ;;  %s309_s6 = inlined_call_operand.vmem [shape: bf16[16,32], index: 6, kind: output, shape index: {}]  }
   0x1   :  { %v209_v0 = vld [vmem:[%s303_s1 + $0x18] sm:$0xff]  ;;  %29 = vst.msk [vmem:[#allocation2] sm:$0xff] %vm28_vm0, %v225_v1  ;;  %v208_v2 = vld [vmem:[%s303_s1 + $0x10] sm:$0xff]  ;;  %v207_v3 = vld [vmem:[%s303_s1 + $0x8] sm:$0xff]  ;;  %219 = vrcp.f32 %v226_v24  ;;  %vm177_vm7 = vcmask 257024  }
   0x2   :  { %30 = vst.msk [vmem:[#allocation2 + $0x8] sm:$0xff] %vm28_vm0, %v225_v1  ;;  %80 = vmatpush.bf16.msra.mxu0 %v209_v0  ;;  %v206_v4 = vld [vmem:[%s303_s1] sm:$0xff] }
   0x3   :  { %v205_v5 = vld [vmem:[%s304_s0] sm:$0xff] }
   0x4   :  { %v211_v10 = vld [vmem:[%s306_s3] sm:$0xff]  }
   0x5   :  { %v216_v11 = vld [vmem:[%s305_s2] ss:$0 sm:$0xff]  ;;  %v212_v14 = vunpack.c.l.bf16 %v211_v10  ;;  %v213_v19 = vunpack.c.h.bf16 %v211_v10 }
   0x6   :  { %81 = vmatpush.bf16.msra.mxu0 %v208_v2  ;;  %v217_v55 = vld [vmem:[%s307_s4] ss:$0 sm:$0xff] }
   0x7   :  { %v220_v25 = vpop.eup %219  ;;  %v218_v58 = vld [vmem:[%s308_s5] ss:$0 sm:$0xff] }
   0x8   :  { %v31_v6 = vld [vmem:[#allocation2] sm:$0xff]  ;;  %v119_v26 = vmul.f32 32.0, %v220_v25  ;;  %vm123_vm2 = vweird.f32 %v220_v25 }
   0x9   :  { %v32_v9 = vld [vmem:[#allocation2 + $0x8] sm:$0xff] }
   0xa   :  { %82 = vmatpush.bf16.msra.mxu0 %v207_v3  ;;  %v120_v27 = vsub.f32 1.0, %v119_v26 }
   0xc   :  { %v121_v28 = vmul.f32 %v220_v25, %v120_v27 }
   0xe   :  { %83 = vmatpush.bf16.msra.mxu0 %v206_v4  ;;  %v122_v29 = vadd.f32 %v220_v25, %v121_v28 }
  0x10   :  { %v124_v30 = vsel %vm123_vm2, %v220_v25, %v122_v29 }
  0x11   :  { %204 = vmatmul.msk.bf16.vlgmr.msra.gmra.mxu0 %vm72_vm1, %v205_v5 }
  0x8e   :  { %v85_v7 = vpop.f32.mrf.mxu0 }
  0x8f   :  { %v90_v8 = vadd.f32 %v85_v7, %v31_v6 }
  0x91   :  { %93 = vst.msk [vmem:[#allocation2] sm:$0xff] %vm28_vm0, %v90_v8 }
  0x96   :  { %v87_v12 = vpop.f32.mrf.mxu0 }
  0x97   :  { %v91_v13 = vadd.f32 %v87_v12, %v32_v9 }
  0x98   :  { %v98_v15 = vld [vmem:[#allocation2] sm:$0xff] }
  0x99   :  { %94 = vst.msk [vmem:[#allocation2 + $0x8] sm:$0xff] %vm28_vm0, %v91_v13  ;;  %v104_v16 = vadd.f32 %v216_v11, %v98_v15 }
  0x9b   :  { %v110_v17 = vadd.f32 %v212_v14, %v104_v16 }
  0x9d   :  { %v112_v18 = vsel %vm28_vm0, %v110_v17, 0.0 }
  0x9e   :  { %113 = vadd.xlane.f32.xlu0 %v112_v18 }
  0xa0   :  { %v99_v20 = vld [vmem:[#allocation2 + $0x8] sm:$0xff] }
  0xa1   :  { %v105_v21 = vadd.f32 %v216_v11, %v99_v20 }
  0xa3   :  { %v111_v22 = vadd.f32 %v213_v19, %v105_v21 }
  0xa5   :  { %v115_v23 = vsel %vm28_vm0, %v111_v22, 0.0 }
  0xa6   :  { %116 = vadd.xlane.f32.xlu0 %v115_v23 }
 0x111   :  { %v114_v31 = vpop.xlane.xlu0 %113 }
 0x112   :  { %v125_v32 = vmul.f32 %v124_v30, %v114_v31 }
 0x114   :  { %v127_v33 = vsub.f32 %v110_v17, %v125_v32 }
 0x116   :  { %v129_v34 = vmul.f32 %v127_v33, %v127_v33 }
 0x118   :  { %v131_v35 = vsel %vm28_vm0, %v129_v34, 0.0 }
 0x119   :  { %132 = vadd.xlane.f32.xlu1 %v131_v35  ;;  %v117_v36 = vpop.xlane.xlu0 %116 }
 0x11a   :  { %v126_v37 = vmul.f32 %v124_v30, %v117_v36 }
 0x11c   :  { %v128_v38 = vsub.f32 %v111_v22, %v126_v37 }
 0x11e   :  { %v130_v39 = vmul.f32 %v128_v38, %v128_v38 }
 0x120   :  { %v134_v40 = vsel %vm28_vm0, %v130_v39, 0.0 }
 0x121   :  { %135 = vadd.xlane.f32.xlu1 %v134_v40 }
 0x18c   :  { %v133_v41 = vpop.xlane.xlu1 %132 }
 0x18d   :  { %v137_v42 = vmul.f32 %v133_v41, %v124_v30 }
 0x18f   :  { %v139_v43 = vadd.f32 1e-12, %v137_v42 }
 0x191   :  { %221 = vrsqrt.f32 %v139_v43  ;;  %vm147_vm4 = vweird.f32 %v139_v43 }
 0x194   :  { %v136_v44 = vpop.xlane.xlu1 %135 }
 0x195   :  { %v138_v45 = vmul.f32 %v136_v44, %v124_v30 }
 0x197   :  { %v222_v46 = vpop.eup %221  ;;  %v140_v47 = vadd.f32 1e-12, %v138_v45 }
 0x198   :  { %v142_v48 = vmul.f32 %v222_v46, %v139_v43  ;;  %vm148_vm3 = vweird.f32 %v222_v46 }
 0x199   :  { %223 = vrsqrt.f32 %v140_v47  ;;  %vm149_vm5 = vmor %vm147_vm4, %vm148_vm3  ;;  %vm157_vm8 = vweird.f32 %v140_v47 }
 0x19a   :  { %v143_v49 = vmul.f32 %v222_v46, %v142_v48 }
 0x19c   :  { %v144_v50 = vmul.f32 0.5, %v143_v49 }
 0x19e   :  { %v145_v51 = vsub.f32 1.5, %v144_v50 }
 0x19f   :  { %v224_v52 = vpop.eup %223 }
 0x1a0   :  { %v146_v53 = vmul.f32 %v222_v46, %v145_v51  ;;  %v152_v54 = vmul.f32 %v224_v52, %v140_v47  ;;  %vm158_vm6 = vweird.f32 %v224_v52 }
 0x1a1   :  { %vm159_vm9 = vmor %vm157_vm8, %vm158_vm6 }
 0x1a2   :  { %v150_v56 = vsel %vm149_vm5, %v222_v46, %v146_v53  ;;  %v153_v57 = vmul.f32 %v224_v52, %v152_v54 }
 0x1a3   :  { %v161_v59 = vmul.f32 %v150_v56, %v127_v33 }
 0x1a4   :  { %v154_v60 = vmul.f32 0.5, %v153_v57 }
 0x1a5   :  { %v167_v61 = vmul.f32 %v217_v55, %v161_v59 }
 0x1a6   :  { %v155_v62 = vsub.f32 1.5, %v154_v60 }
 0x1a7   :  { %v173_v63 = vadd.f32 %v218_v58, %v167_v61 }
 0x1a8   :  { %v156_v0 = vmul.f32 %v224_v52, %v155_v62 }
 0x1a9   :  { %v175_v1 = vpack.c.bf16 %v173_v63, %v173_v63 }
 0x1aa   :  { %v160_v2 = vsel %vm159_vm9, %v224_v52, %v156_v0 }
 0x1ab   :  { %178 = vst.msk [vmem:[%s309_s6] sm:$0xf] %vm177_vm7, %v175_v1  ;;  %v162_v3 = vmul.f32 %v160_v2, %v128_v38 }
 0x1ad   :  { %v168_v4 = vmul.f32 %v217_v55, %v162_v3 }
 0x1af   :  { %v174_v5 = vadd.f32 %v218_v58, %v168_v4 }
 0x1b1   :  { %v176_v6 = vpack.c.bf16 %v174_v5, %v174_v5 }
 0x1b3   :  { %179 = vst.msk [vmem:[%s309_s6 + $0x4] sm:$0xf] %vm177_vm7, %v176_v6 }

// kernel: bert_classifier_forward.19
= control target key start
LH: loop header
LB: loop body
LE: loop exit
PB: predicated region body
PF: predicated region fallthrough
CT: control target
= control target key end

     0   :  { %s224_s0 = inlined_call_operand.vmem [shape: bf16[2,32], index: 0, kind: input, shape index: {}]   ;;  %s225_s1 = inlined_call_operand.vmem [shape: bf16[32,32], index: 1, kind: input, shape index: {}]   ;;  %s226_s2 = inlined_call_operand.vmem [shape: f32[1,32], index: 2, kind: input, shape index: {}]   ;;  %s227_s3 = inlined_call_operand.vmem [shape: bf16[32,3], index: 3, kind: input, shape index: {}]   ;;  %s228_s4 = inlined_call_operand.vmem [shape: f32[1,3], index: 4, kind: input, shape index: {}]   ;;  %s229_s5 = inlined_call_operand.hbm [shape: f32[2,3], index: 5, kind: output, shape index: {}]  }
   0x1   :  { %v135_v0 = vld [vmem:[%s225_s1 + $0x8] sm:$0xff]  ;;  %v134_v1 = vld [vmem:[%s225_s1] sm:$0xff] }
   0x2   :  { %53 = vmatpush.bf16.msra.mxu0 %v135_v0 }
   0x3   :  { %10 = vsyncpa [#allocation3], 0  ;;  %v22_v2 = vld [vmem:[%s224_s0] sm:$0x1]  ;;  %vm43_vm0 = vcmask 261120   ;;  %v137_v3 = vld [vmem:[%s227_s3 + $0x8] sm:$0xff] }
   0x4   :  { %91 = vmatpush.bf16.msra.mxu1 %v137_v3  ;;  %v136_v4 = vld [vmem:[%s227_s3] sm:$0xff]  ;;  %s169_s30 = smov [#allocation2]   ;;  %s107_s8 = sshll.u32 %s229_s5, 4  ;;  %vm98_vm1 = vcmask 17408   ;;  %s108_s8 = int_to_ptr.hbm [resolvable:$true] %s107_s8 }
   0x5   :  { %v139_v5 = vld [vmem:[%s226_s2] ss:$0 sm:$0xff]  ;;  %s105_s6 = sshll.u32 %s169_s30, 4  ;;  %s106_s6 = int_to_ptr.vmem [resolvable:$true] %s105_s6 }
   0x6   :  { %54 = vmatpush.bf16.msra.mxu0 %v134_v1  ;;  %v140_v11 = vld [vmem:[%s228_s4] ss:$0 sm:$0xff] }
   0x8   :  { %92 = vmatpush.bf16.msra.mxu1 %v136_v4 }
   0x9   :  { %124 = vmatmul.msk.bf16.vlgmr.msra.gmra.mxu0 %vm43_vm0, %v22_v2 }
  0x86   :  { %v56_v6 = vpop.f32.mrf.mxu0 }
  0x87   :  { %v57_v7 = vadd.f32 %v139_v5, %v56_v6 }
  0x89   :  { %141 = vtanh.f32 %v57_v7 }
  0x8e   :  { %v58_v8 = vpop.f32.mrf.mxu0 }
  0x8f   :  { %v142_v9 = vpop.eup %141 }
  0x90   :  { %v61_v10 = vpack.c.bf16 %v142_v9, %v142_v9 }
  0x92   :  { %133 = vmatmul.msk.bf16.vlgmr.msra.gmra.mxu1 %vm43_vm0, %v61_v10 }
 0x10f   :  { %v94_v12 = vpop.f32.mrf.mxu1 }
 0x110   :  { %v95_v13 = vadd.f32 %v140_v11, %v94_v12 }
 0x112   :  { %99 = vst.msk [vmem:[#allocation2] sm:$0x3] %vm98_vm1, %v95_v13 }
 0x113   :  { %110 = dma.vmem_to_hbm [thread:$0]  %s106_s6, 32, %s108_s8, [#allocation3]  }
 0x117   :  { %v96_v14 = vpop.f32.mrf.mxu1 }
 0x118   :  { %167 = dma.done.wait [#allocation3], 32  }
 0x119   :  { %168 = vsyncadd [#allocation3], 4294967264 }
 0x11a   :  { %115 = vsyncpa [#allocation3], 1 }

</bundles_post_ra>
